<compile_context>
chip_gen: v7x
topology: tpu7x:2x2x1
jax: 0.10.0
libtpu: 0.0.40
codegen_flags: <defaults>
</compile_context>

<pallas_src>
import functools

import jax
import jax.numpy as jnp
from jax.experimental import pallas as pl
from jax.experimental.pallas import tpu as pltpu


# ------------------------------------------------------------------ helpers

def _round_up(x, m):
    return ((x + m - 1) // m) * m


def _choose_k_tiling(K):
    """Pad K only to a multiple of 128; pick the largest TK in {512,384,256,128} dividing it."""
    Kp = _round_up(K, 128)
    if Kp <= 512:
        return Kp, Kp
    for tk in (512, 384, 256, 128):
        if Kp % tk == 0:
            return Kp, tk
    return Kp, 128  # unreachable (128 always divides Kp)


def _choose_m_tiling(M):
    """Largest TM in {512,256,128,round_up(M,8)} that does not exceed the (padded) M."""
    m8 = _round_up(M, 8)
    for tm in (512, 256, 128):
        if m8 >= tm:
            return tm
    return m8


# ------------------------------------------------------------------ Pallas kernels

def _conv_matmul_kernel(*refs, has_residual, apply_relu):
    """K-accumulating matmul tile with fused bias / residual / ReLU epilogue.

    Grid = (M tiles [parallel], K tiles [arbitrary, last]).  bf16 operands, f32 accumulate.
    """
    if has_residual:
        a_ref, b_ref, bias_ref, res_ref, o_ref, acc_ref = refs
    else:
        a_ref, b_ref, bias_ref, o_ref, acc_ref = refs
        res_ref = None

    k = pl.program_id(1)

    @pl.when(k == 0)
    def _():
        acc_ref[...] = jnp.zeros_like(acc_ref)

    acc_ref[...] += jnp.dot(a_ref[...], b_ref[...],
                            preferred_element_type=jnp.float32)

    @pl.when(k == pl.num_programs(1) - 1)
    def _():
        out = acc_ref[...] + bias_ref[...]
        if res_ref is not None:
            out = out + res_ref[...].astype(jnp.float32)
        if apply_relu:
            out = jnp.maximum(out, 0.0)
        o_ref[...] = out.astype(o_ref.dtype)   # single fused store in the output dtype (bf16)


def pallas_matmul_bias_act(a, w, bias, residual=None, apply_relu=True,
                           out_dtype=jnp.bfloat16):
    """out[M,N] = act(a[M,K] @ w[K,N] + bias[N] (+ residual[M,N])), M- and K-tiled on the MXU."""
    M, K = a.shape
    Kw, N = w.shape
    assert K == Kw
    Kp, TK = _choose_k_tiling(K)
    TM = _choose_m_tiling(M)
    Mp = _round_up(M, TM)

    a = a.astype(jnp.bfloat16)
    w = w.astype(jnp.bfloat16)
    if Mp != M or Kp != K:
        a = jnp.pad(a, ((0, Mp - M), (0, Kp - K)))
    if Kp != K:
        w = jnp.pad(w, ((0, Kp - K), (0, 0)))
    bias2 = bias.reshape(1, N).astype(jnp.float32)

    in_specs = [
        pl.BlockSpec((TM, TK), lambda i, k: (i, k)),   # im2col patches tile (bf16)
        pl.BlockSpec((TK, N), lambda i, k: (k, 0)),    # BN-folded weight tile (bf16)
        pl.BlockSpec((1, N), lambda i, k: (0, 0)),     # folded BN bias (f32)
    ]
    args = [a, w, bias2]
    if residual is not None:
        residual = residual.astype(jnp.bfloat16)
        if Mp != M:
            residual = jnp.pad(residual, ((0, Mp - M), (0, 0)))
        in_specs.append(pl.BlockSpec((TM, N), lambda i, k: (i, 0)))
        args.append(residual)

    kernel = functools.partial(
        _conv_matmul_kernel,
        has_residual=residual is not None,
        apply_relu=apply_relu,
    )
    out = pl.pallas_call(
        kernel,
        out_shape=jax.ShapeDtypeStruct((Mp, N), out_dtype),
        grid_spec=pltpu.PrefetchScalarGridSpec(
            num_scalar_prefetch=0,
            grid=(Mp // TM, Kp // TK),
            in_specs=in_specs,
            out_specs=pl.BlockSpec((TM, N), lambda i, k: (i, 0)),
            scratch_shapes=[pltpu.VMEM((TM, N), jnp.float32)],
        ),
        compiler_params=pltpu.CompilerParams(
            dimension_semantics=("parallel", "arbitrary"),
        ),
    )(*args)
    if Mp != M:
        out = out[:M]
    return out


def _head_kernel(x_ref, w_ref, b_ref, o_ref):
    # global average pool (1/S already folded into w) over flattened spatial axis, fc, sigmoid
    pooled = jnp.sum(x_ref[...].astype(jnp.float32), axis=1)            # (N, C)
    logits = jnp.dot(pooled, w_ref[...],
                     preferred_element_type=jnp.float32) + b_ref[...]   # (N, 16)
    o_ref[...] = 1.0 / (1.0 + jnp.exp(-logits))


def pallas_head(x, w, b):
    # x: (N, T*H*W, C) bf16; w: (C, 16); b: (16,)
    N, S, C = x.shape
    nout = w.shape[1]
    w_scaled = (w.astype(jnp.float32) / jnp.float32(S))    # fold AdaptiveAvgPool3d(1) divisor
    return pl.pallas_call(
        _head_kernel,
        out_shape=jax.ShapeDtypeStruct((N, nout), jnp.float32),
    )(x.astype(jnp.bfloat16), w_scaled, b.reshape(1, nout).astype(jnp.float32))


# ------------------------------------------------------------------ JAX glue (channels-last im2col, BN fold)

def im2col_3d_cl(x, ksize, stride, padding):
    """x: (N, T, H, W, C) -> patches (N*To*Ho*Wo, kt*kh*kw*C); column order (dt, dh, dw, c)."""
    N, T, H, W, C = x.shape
    kt, kh, kw = ksize
    st, sh, sw = stride
    pt, ph, pw = padding
    xp = jnp.pad(x, ((0, 0), (pt, pt), (ph, ph), (pw, pw), (0, 0)))
    To = (T + 2 * pt - kt) // st + 1
    Ho = (H + 2 * ph - kh) // sh + 1
    Wo = (W + 2 * pw - kw) // sw + 1
    cols = []
    for dt in range(kt):
        for dh in range(kh):
            for dw in range(kw):
                cols.append(xp[:,
                               dt:dt + To * st:st,
                               dh:dh + Ho * sh:sh,
                               dw:dw + Wo * sw:sw, :])
    cols = jnp.stack(cols, axis=4)                       # (N, To, Ho, Wo, kt*kh*kw, C)
    patches = cols.reshape(N * To * Ho * Wo, kt * kh * kw * C)
    return patches, (To, Ho, Wo)


def conv3d_bn(x, p, stride, padding, residual=None, apply_relu=True):
    """Conv3d(bias=False) + folded BatchNorm3d (+ residual) (+ ReLU).  x is channels-last."""
    w, scale, shift = p["w"], p["scale"], p["shift"]
    cout, cin = w.shape[0], w.shape[1]
    ksize = tuple(w.shape[2:])
    # fold BN scale into the conv weights (f32), lay out channels-last: (kt,kh,kw,Cin, Cout)
    w_f = w * scale[:, None, None, None, None]
    w_cl = jnp.transpose(w_f, (2, 3, 4, 1, 0)).reshape(-1, cout)

    Nb = x.shape[0]
    if ksize == (1, 1, 1) and padding == (0, 0, 0):
        # 1x1x1 downsample: no im2col, just a strided channels-last reshape
        st, sh, sw = stride
        xs = x[:, ::st, ::sh, ::sw, :]
        To, Ho, Wo = xs.shape[1], xs.shape[2], xs.shape[3]
        patches = xs.reshape(-1, cin)
    else:
        patches, (To, Ho, Wo) = im2col_3d_cl(x, ksize, stride, padding)

    res2d = None
    if residual is not None:
        res2d = residual.reshape(-1, cout)

    out2d = pallas_matmul_bias_act(patches, w_cl, shift,
                                   residual=res2d, apply_relu=apply_relu)
    return out2d.reshape(Nb, To, Ho, Wo, cout)


# ------------------------------------------------------------------ parameters (deterministic)

def _conv_bn_params(key, cin, cout, ksize):
    k1, k2, k3, k4, k5 = jax.random.split(key, 5)
    fan_in = cin * ksize[0] * ksize[1] * ksize[2]
    w = jax.random.normal(k1, (cout, cin) + tuple(ksize), jnp.float32) * jnp.sqrt(2.0 / fan_in)
    gamma = jax.random.uniform(k2, (cout,), jnp.float32, 0.8, 1.2)
    beta = jax.random.normal(k3, (cout,), jnp.float32) * 0.05
    mean = jax.random.normal(k4, (cout,), jnp.float32) * 0.05
    var = jax.random.uniform(k5, (cout,), jnp.float32, 0.8, 1.2)
    scale = gamma / jnp.sqrt(var + 1e-5)
    shift = beta - mean * scale
    return {"w": w, "scale": scale, "shift": shift}


def build_params(key):
    it = iter(jax.random.split(key, 32))
    # stem: Conv3d(3,64,(3,7,7)) + BN + ReLU
    params = {"stem": _conv_bn_params(next(it), 3, 64, (3, 7, 7))}
    cfg = [(64, 64, 1), (64, 128, 2), (128, 256, 2), (256, 512, 2)]  # r3d_18 layer1..4
    layers = []
    for cin, cout, stride in cfg:
        blocks = []
        for b in range(2):
            in_ch = cin if b == 0 else cout
            s = stride if b == 0 else 1
            blk = {
                "conv1": _conv_bn_params(next(it), in_ch, cout, (3, 3, 3)),
                "conv2": _conv_bn_params(next(it), cout, cout, (3, 3, 3)),
                "stride": s,
            }
            if b == 0 and (stride != 1 or in_ch != cout):
                blk["down"] = _conv_bn_params(next(it), in_ch, cout, (1, 1, 1))
            blocks.append(blk)
        layers.append(blocks)
    params["layers"] = layers
    # self.fc: initialize_weights() -> normal(0, 0.01) weight, zero bias
    params["fc_w"] = jax.random.normal(next(it), (512, 16), jnp.float32) * 0.01
    params["fc_b"] = jnp.zeros((16,), jnp.float32)
    return params


# ------------------------------------------------------------------ forward

def v2midi_forward(params, x):
    # x arrives NCDHW (PyTorch convention); convert once to channels-last bf16 (N, T, H, W, C)
    h = jnp.transpose(x, (0, 2, 3, 4, 1)).astype(jnp.bfloat16)
    # stem: Conv3d(3,64,(3,7,7),stride=(1,2,2),pad=(1,3,3)) + BN + ReLU
    h = conv3d_bn(h, params["stem"], stride=(1, 2, 2), padding=(1, 3, 3))
    # residual layers (BasicBlock x2 each)
    for blocks in params["layers"]:
        for blk in blocks:
            s = blk["stride"]
            if "down" in blk:
                identity = conv3d_bn(h, blk["down"], stride=(s, s, s),
                                     padding=(0, 0, 0), apply_relu=False)
            else:
                identity = h
            out = conv3d_bn(h, blk["conv1"], stride=(s, s, s), padding=(1, 1, 1))
            h = conv3d_bn(out, blk["conv2"], stride=(1, 1, 1), padding=(1, 1, 1),
                          residual=identity, apply_relu=True)
    # AdaptiveAvgPool3d(1) + flatten + fc(512,16) + sigmoid  -> fused Pallas head kernel
    Nb, T, H, W, C = h.shape
    hx = h.reshape(Nb, T * H * W, C)
    return pallas_head(hx, params["fc_w"], params["fc_b"])


if __name__ == "__main__":
    key = jax.random.PRNGKey(0)
    kp, kx = jax.random.split(key)
    params = build_params(kp)
    # video input (N, C=3, T, H, W) — small shapes consistent with r3d_18
    x = jax.random.normal(kx, (2, 3, 4, 32, 32), jnp.float32)
    out = v2midi_forward(params, x)
    out = jax.block_until_ready(out)
    assert out.shape == (2, 16), out.shape
    assert bool(jnp.all(jnp.isfinite(out)))
    assert bool(jnp.all((out >= 0.0) & (out <= 1.0)))  # sigmoid range
    print("KERNEL_OK")
</pallas_src>

<mosaic_0001>
module attributes {stable_mosaic.version = 11 : i64} {
  func.func @_conv_matmul_kernel(%arg0: i32, %arg1: i32, %arg2: memref<512x512xbf16, #tpu.memory_space<vmem>>, %arg3: memref<512x64xbf16, #tpu.memory_space<vmem>>, %arg4: memref<1x64xf32, #tpu.memory_space<vmem>>, %arg5: memref<512x64xbf16, #tpu.memory_space<vmem>>, %arg6: memref<512x64xf32, #tpu.memory_space<vmem>>) attributes {dimension_semantics = [#tpu.dimension_semantics<parallel>, #tpu.dimension_semantics<arbitrary>], iteration_bounds = array<i64: 4, 1>, scalar_prefetch = 0 : i64, scratch_operands = 1 : i64, tpu.core_type = #tpu.core_type<tc>, window_params = [{transform_indices = @transform_0, window_bounds = array<i64: 512, 512>}, {transform_indices = @transform_1, window_bounds = array<i64: 512, 64>}, {pipeline_mode = #tpu.pipeline_mode<synchronous>, transform_indices = @transform_2, window_bounds = array<i64: 1, 64>}, {transform_indices = @transform_3, window_bounds = array<i64: 512, 64>}]} {
    %c0_i32 = arith.constant 0 : i32
    %0 = arith.cmpi eq, %arg1, %c0_i32 : i32
    %1 = arith.extui %0 : i1 to i32
    %c0_i32_0 = arith.constant 0 : i32
    %2 = arith.cmpi ne, %1, %c0_i32_0 : i32
    scf.if %2 {
      %cst_10 = arith.constant 0.000000e+00 : f32
      %12 = vector.broadcast %cst_10 : f32 to vector<512x64xf32>
      %c0_11 = arith.constant 0 : index
      %c0_12 = arith.constant 0 : index
      %13 = vector.load %arg6[%c0_11, %c0_12] : memref<512x64xf32, #tpu.memory_space<vmem>>, vector<512x64xf32>
      tpu.vector_store %arg6[%c0_11, %c0_12], %12 {strides = array<i32>} : memref<512x64xf32, #tpu.memory_space<vmem>>, vector<512x64xf32>,
    } else {
    }
    %c0 = arith.constant 0 : index
    %c0_1 = arith.constant 0 : index
    %3 = vector.load %arg6[%c0, %c0_1] : memref<512x64xf32, #tpu.memory_space<vmem>>, vector<512x64xf32>
    %c0_2 = arith.constant 0 : index
    %c0_3 = arith.constant 0 : index
    %4 = vector.load %arg2[%c0_2, %c0_3] : memref<512x512xbf16, #tpu.memory_space<vmem>>, vector<512x512xbf16>
    %c0_4 = arith.constant 0 : index
    %c0_5 = arith.constant 0 : index
    %5 = vector.load %arg3[%c0_4, %c0_5] : memref<512x64xbf16, #tpu.memory_space<vmem>>, vector<512x64xbf16>
    %cst = arith.constant dense<0.000000e+00> : vector<512x64xf32>
    %6 = tpu.matmul %4, %5, %cst {dimension_numbers = #tpu.dot_dimension_numbers<[1], [0], [0], [1], [0, 0, 1, 1], [], []>} : vector<512x512xbf16>, vector<512x64xbf16>, vector<512x64xf32> -> vector<512x64xf32>
    %7 = arith.addf %3, %6 : vector<512x64xf32>
    %c0_6 = arith.constant 0 : index
    %c0_7 = arith.constant 0 : index
    %8 = vector.load %arg6[%c0_6, %c0_7] : memref<512x64xf32, #tpu.memory_space<vmem>>, vector<512x64xf32>
    tpu.vector_store %arg6[%c0_6, %c0_7], %7 {strides = array<i32>} : memref<512x64xf32, #tpu.memory_space<vmem>>, vector<512x64xf32>,
    %c0_i32_8 = arith.constant 0 : i32
    %9 = arith.cmpi eq, %arg1, %c0_i32_8 : i32
    %10 = arith.extui %9 : i1 to i32
    %c0_i32_9 = arith.constant 0 : i32
    %11 = arith.cmpi ne, %10, %c0_i32_9 : i32
    scf.if %11 {
      %c0_10 = arith.constant 0 : index
      %c0_11 = arith.constant 0 : index
      %12 = vector.load %arg6[%c0_10, %c0_11] : memref<512x64xf32, #tpu.memory_space<vmem>>, vector<512x64xf32>
      %c0_12 = arith.constant 0 : index
      %c0_13 = arith.constant 0 : index
      %13 = vector.load %arg4[%c0_12, %c0_13] : memref<1x64xf32, #tpu.memory_space<vmem>>, vector<1x64xf32>
      %14 = vector.broadcast %13 : vector<1x64xf32> to vector<512x64xf32>
      %15 = arith.addf %12, %14 : vector<512x64xf32>
      %cst_14 = arith.constant 0.000000e+00 : f32
      %16 = vector.broadcast %cst_14 : f32 to vector<512x64xf32>
      %17 = arith.maximumf %15, %16 : vector<512x64xf32>
      %18 = arith.truncf %17 : vector<512x64xf32> to vector<512x64xbf16>
      %c0_15 = arith.constant 0 : index
      %c0_16 = arith.constant 0 : index
      %19 = vector.load %arg5[%c0_15, %c0_16] : memref<512x64xbf16, #tpu.memory_space<vmem>>, vector<512x64xbf16>
      tpu.vector_store %arg5[%c0_15, %c0_16], %18 {strides = array<i32>} : memref<512x64xbf16, #tpu.memory_space<vmem>>, vector<512x64xbf16>,
    } else {
    }
    return
  }
  func.func @transform_0(%arg0: i32, %arg1: i32) -> (i32, i32) {
    %c0_i32 = arith.constant 0 : i32
    return %arg0, %arg1 : i32, i32
  }
  func.func @transform_1(%arg0: i32, %arg1: i32) -> (i32, i32) {
    %c0_i32 = arith.constant 0 : i32
    %c0_i32_0 = arith.constant 0 : i32
    return %arg1, %c0_i32 : i32, i32
  }
  func.func @transform_2(%arg0: i32, %arg1: i32) -> (i32, i32) {
    %c0_i32 = arith.constant 0 : i32
    %c0_i32_0 = arith.constant 0 : i32
    %c0_i32_1 = arith.constant 0 : i32
    return %c0_i32, %c0_i32_0 : i32, i32
  }
  func.func @transform_3(%arg0: i32, %arg1: i32) -> (i32, i32) {
    %c0_i32 = arith.constant 0 : i32
    %c0_i32_0 = arith.constant 0 : i32
    return %arg0, %c0_i32 : i32, i32
  }
}

</mosaic_0001>

<bundles_post_ra>
// kernel: tpu_custom_call.1
= control target key start
LH: loop header
LB: loop body
LE: loop exit
PB: predicated region body
PF: predicated region fallthrough
CT: control target
= control target key end

     0   :  { %8 = vsyncpa [#allocation4], 0  ;;  %s4313_s0 = inlined_call_operand.hbm [shape: bf16[2048,512], index: 0, kind: input, shape index: {}]   ;;  %s4314_s1 = inlined_call_operand.vmem [shape: bf16[512,64], index: 1, kind: input, shape index: {}]   ;;  %s4315_s2 = inlined_call_operand.hbm [shape: f32[1,64], index: 2, kind: input, shape index: {}]   ;;  %s4316_s3 = inlined_call_operand.vmem [shape: bf16[2048,64], index: 3, kind: output, shape index: {}]  }
   0x1   :  { %10 = vsyncpa [#allocation4 + $0x1], 0 }
   0x2   :  { %11 = vsyncpa [#allocation6], 0  ;;  %s3481_s12 = smov 0   ;;  %s3483_s13 = smov 0  }
   0x3   :  { %s3485_s14 = smov 0   ;;  %s3487_s15 = smov 0  }
   0x4   :  { %s3489_s16 = smov 0   ;;  %s3491_s17 = smov 0  }
   0x5 LB: > { %s2738_s18 = sadd.s32 4294967295, %s3453_s17   ;;  %s38_s19 = sadd.s32 1, %s3441_s14  ;;  %s3453_s17 = sphi %s3491_s17, %s17_s17   ;;  %s3449_s16 = sphi %s3489_s16, %s4337_s16   ;;  %s3445_s15 = sphi %s3487_s15, %s4336_s15   ;;  %s3441_s14 = sphi %s3485_s14, %s4335_s14   ;;  %s3437_s13 = sphi %s3483_s13, %s4334_s13   ;;  %s3433_s12 = sphi %s3481_s12, %s4333_s12  }
   0x6   : > { %p45_p0 = scmp.ne.s32.totalorder %s3441_s14, %s3437_s13  ;;  %p46_p1 = scmp.eq.s32.totalorder %s3453_s17, 0 }
   0x7   : > { %p51_p2 = scmp.ne.s32.totalorder %s3437_s13, %s3433_s12  ;;  %p3515_p3 = scmp.eq.s32.totalorder %s2738_s18, 0 }
   0x8   : > { %p47_p4 = por %p46_p1, %p45_p0  ;;  %p2740_p5 = scmp.ge.s32.totalorder %s3453_s17, 1 }
   0x9   : > { %s4322_s20 = scalar_select %p3515_p3, 1, 0 }
   0xa   : > { %p3522_p6 = por %p3515_p3, %p51_p2  ;;  %p135_p7 = scmp.lt.s32.totalorder %s3453_s17, 5 }
   0xb   : > { %s3455_s23 = smov [#allocation5]   ;;  %p3061_p10 = scmp.lt.s32.totalorder %s3453_s17, 4 }
   0xc   : > { %s4323_s21 = scalar_select %p3522_p6, 1, 0 }
   0xd   : > { %p3527_p8 = pnand %p2740_p5, %p135_p7  ;;  %s157_s24 = sshll.u32 %s3455_s23, 4  ;;  %s158_s24 = int_to_ptr.vmem [resolvable:$true] %s157_s24 }
   0xe   : > { %s168_s25 = sand.u32 1, %s3441_s14   ;;  %p3541_p12 = pnand %p3061_p10, %p47_p4 }
   0xf   : > { %s4324_s22 = scalar_select %p3527_p8, 1, 0 }
  0x10   : > { %p3052_p9 = pneg %p3527_p8  ;;  %s3341_s30 = scalar_lea.hbm %s4315_s2, 16 }
  0x11   : > { %s4326_s27 = scalar_select %p3541_p12, 1, 0 }
  0x12   : > { %p3537_p11 = pnand %p3052_p9, %p3515_p3  ;;  %p3342_p13 = scmp.ne.s32.totalorder %s4315_s2, %s3341_s30 }
  0x13   : > { %p3348_p5 = scmp.lt.u32.totalorder %s3341_s30, %s4315_s2 }
  0x14   : > { %p3343_p0 = pneg %p3537_p11 }
  0x16   : > { %p3344_p1 = pnand %p3343_p0, %p3342_p13 }
  0x18   : > { %p3345_p2 = pneg %p3344_p1 }
  0x1a   : > { %p3350_p4 = pnand %p3348_p5, %p3345_p2 }
  0x1c   : > { %3353 = shalt.err (!%p3350_p4)
}
  0x1d   : > { %s3354_s8 = scalar_lea.vmem %s158_s24, 16  ;;  %s3361_s9 = scalar_lea.vmem %s158_s24, 32 }
  0x1e   : > { %p3355_p7 = scmp.ne.s32.totalorder %s158_s24, %s3354_s8  ;;  %p3362_p3 = scmp.lt.s32.totalorder %s158_s24, %s158_s24 }
  0x1f   : > { %p3363_p6 = scmp.lt.s32.totalorder %s3361_s9, %s3354_s8 }
  0x20   : > { %p3357_p9 = pnand %p3355_p7, %p3343_p0 }
  0x21   : > { %p3364_p8 = por %p3363_p6, %p3362_p3 }
  0x22   : > { %p3358_p10 = pneg %p3357_p9 }
  0x24   : > { %p3365_p12 = pnand %p3364_p8, %p3358_p10 }
  0x26   : > { %3368 = shalt.err (!%p3365_p12)
}
  0x27   : > { %3055 = dma.hbm_to_vmem [thread:$0]  (!%p3537_p11), %s4315_s2, 16, %s158_s24, [#allocation6]  }
  0x28   : > { %s29_s12 = sadd.s32 1, %s3449_s16  ;;  %s2744_s18 = sshll.u32 %s168_s25, 10 }
  0x29   : > { %p31_p13 = scmp.ge.s32.totalorder %s29_s12, 4  ;;  %s2981_s23 = sshll.u32 %s3449_s16, 14 }
  0x2a   : > { %s172_s28 = scalar_lea.vmem [#allocation3], %s2744_s18  ;;  %s3570_s4 = scalar_lea.hbm %s4313_s0, %s2981_s23 }
  0x2b   : > { %s182_s29 = sshll.u32 %s172_s28, 4  ;;  %s4339_s12 = smov (%p31_p13, %s29_s12), 0  ;;  %s3572_s29 = int_to_ptr.vmem [resolvable:$true] %s182_s29 }
  0x2c   : > { %s33_s24 = ssub.s32 %s3449_s16, %s4339_s12  ;;  %s3582_s6 = scalar_lea.sflag [#allocation4], %s168_s25 }
  0x2d   : > { %p3576_p3 = scmp.eq.s32.totalorder %s33_s24, 0  ;;  %s3369_s7 = scalar_lea.hbm %s3570_s4, 16384 }
  0x2e   : > { %p3370_p6 = scmp.ne.s32.totalorder %s3570_s4, %s3369_s7  ;;  %p4328_p8 = scmp.ne.s32.totalorder %s4326_s27, 0 }
  0x2f   : > { %s3374_s10 = scalar_lea.hbm %s4313_s0, 65536  ;;  %p3375_p1 = scmp.lt.u32.totalorder %s3570_s4, %s4313_s0 }
  0x30   : > { %p3371_p11 = pneg %p4328_p8  ;;  %p3376_p2 = scmp.lt.u32.totalorder %s3374_s10, %s3369_s7 }
  0x31   : > { %p3378_p4 = scmp.lt.u32.totalorder %s3369_s7, %s3570_s4 }
  0x32   : > { %p3372_p12 = pnand %p3371_p11, %p3370_p6  ;;  %p3377_p5 = por %p3376_p2, %p3375_p1 }
  0x34   : > { %p3373_p0 = pneg %p3372_p12  ;;  %p3379_p7 = por %p3378_p4, %p3377_p5 }
  0x36   : > { %p3380_p9 = pnand %p3379_p7, %p3373_p0 }
  0x38   : > { %3383 = shalt.err (!%p3380_p9)
}
  0x39   : > { %s3384_s25 = scalar_lea.vmem %s3572_s29, 16384  ;;  %s3456_s23 = smov [#allocation3]  }
  0x3a   : > { %p3385_p10 = scmp.ne.s32.totalorder %s3572_s29, %s3384_s25  ;;  %s3389_s28 = sshll.u32 %s3456_s23, 4  ;;  %s3390_s28 = int_to_ptr.vmem [resolvable:$false] %s3389_s28 }
  0x3b   : > { %s3391_s26 = scalar_lea.vmem %s3390_s28, 32768  ;;  %p3392_p12 = scmp.lt.s32.totalorder %s3572_s29, %s3390_s28 }
  0x3c   : > { %p3387_p13 = pnand %p3385_p10, %p3371_p11  ;;  %p3393_p1 = scmp.lt.s32.totalorder %s3391_s26, %s3384_s25 }
  0x3e   : > { %p3388_p6 = pneg %p3387_p13  ;;  %p3394_p2 = por %p3393_p1, %p3392_p12 }
  0x40   : > { %p3395_p5 = pnand %p3394_p2, %p3388_p6 }
  0x42   : > { %3398 = shalt.err (!%p3395_p5)
}
  0x43   : > { %s3457_s30 = smov 256   ;;  %s3458_s24 = smov 16  }
  0x44   : > { %3059 = dma.hbm_to_vmem [thread:$0]  (!%p4328_p8), %s3570_s4, 16384, %s3572_s29, %s3582_s6, %s3457_s30, %s3457_s30, %s3458_s24  }
  0x45   : > { %s3615_s7 = scalar_select %p3576_p3, %s3441_s14, %s38_s19  }
  0x46   : > { %p4329_p11 = scmp.ne.s32.totalorder %s4324_s22, 0 }
  0x47   : > { %s196_s8 = sand.u32 (!%p4329_p11), 1, %s3437_s13   ;;  %p4330_p0 = scmp.ne.s32.totalorder (!%p4329_p11), %s4323_s21, 0 }
  0x48   : > { %194 = sbr.rel (%p4329_p11) target bundleno = 629 (0x275), region = 32  ;;  %s2749_s9 = sshll.u32 (!%p4329_p11), %s196_s8, 10 }
  0x49   : > { %s197_s10 = scalar_lea.sflag (!%p4329_p11), [#allocation4], %s196_s8  ;;  %s3620_s11 = scalar_lea.vmem (!%p4329_p11), [#allocation3], %s2749_s9 }
  0x4f   : > { %3424 = dma.done.wait (%p4330_p0), %s197_s10, 16384  }
  0x50   : > { %3426 = vsyncadd (%p4330_p0), %s197_s10, 4294950912  ;;  %p4331_p8 = scmp.ne.s32.totalorder %s4322_s20, 0 }
  0x52   : > { %3428 = dma.done.wait (%p4331_p8), [#allocation6], 16  }
  0x53   : > { %3430 = vsyncadd (%p4331_p8), [#allocation6], 4294967280  ;;  %v3459_v0 = vmov 0   ;;  %v3116_v1 = vld [vmem:[%s4314_s1] sm:$0xff]   ;;  %v3118_v3 = vld [vmem:[%s4314_s1 + $0x8] sm:$0xff]   ;;  %vm251_vm0 = vcmask 523264  }
  0x54   : > { %1404 = vmatprep.subr.bf16.mxu0 %v3459_v0  ;;  %1693 = vmatprep.subr.bf16.mxu1 %v3459_v0  ;;  %v3117_v2 = vld [vmem:[%s4314_s1 + $0x80] sm:$0xff]   ;;  %v3119_v4 = vld [vmem:[%s4314_s1 + $0x88] sm:$0xff]   ;;  %v3120_v5 = vld [vmem:[%s4314_s1 + $0x10] sm:$0xff]   ;;  %s2751_s5 = sshll.u32 %s3445_s15, 6  ;;  %vm2569_vm1 = vcmask 519168  }
  0x55   : > { %1405 = vmatpush1.bf16.msra.mxu0 %v3116_v1  ;;  %1694 = vmatpush1.bf16.msra.mxu1 %v3117_v2  ;;  %v3121_v6 = vld [vmem:[%s4314_s1 + $0x90] sm:$0xff]   ;;  %v3122_v7 = vld [vmem:[%s4314_s1 + $0x18] sm:$0xff]   ;;  %v3124_v9 = vld [vmem:[%s4314_s1 + $0x20] sm:$0xff]   ;;  %p241_p3 = scmp.lt.s32.totalorder %s2751_s5, 255 }
  0x56   : > { %1406 = vmatprep.subr.bf16.mxu0 %v3459_v0  ;;  %1695 = vmatprep.subr.bf16.mxu1 %v3459_v0  ;;  %v3123_v8 = vld [vmem:[%s4314_s1 + $0x98] sm:$0xff]   ;;  %v3125_v10 = vld [vmem:[%s4314_s1 + $0xa0] sm:$0xff]   ;;  %v3126_v11 = vld [vmem:[%s4314_s1 + $0x28] sm:$0xff]  }
  0x57   : > { %v3127_v12 = vld [vmem:[%s4314_s1 + $0xa8] sm:$0xff]   ;;  %v3128_v13 = vld [vmem:[%s4314_s1 + $0x30] sm:$0xff]   ;;  %v3130_v15 = vld [vmem:[%s4314_s1 + $0x38] sm:$0xff]   ;;  %s4341_s5 = smov (!%p241_p3, %s2751_s5), 255 }
  0x58   : > { %v3129_v14 = vld [vmem:[%s4314_s1 + $0xb0] sm:$0xff]   ;;  %v3131_v16 = vld [vmem:[%s4314_s1 + $0xb8] sm:$0xff]   ;;  %v3132_v17 = vld [vmem:[%s4314_s1 + $0x40] sm:$0xff]   ;;  %s2752_s15 = sshll.u32 %s4341_s5, 2 }
  0x59   : > { %1407 = vmatpush1.bf16.msra.mxu0 %v3118_v3  ;;  %1696 = vmatpush1.bf16.msra.mxu1 %v3119_v4  ;;  %v3133_v18 = vld [vmem:[%s4314_s1 + $0xc0] sm:$0xff]   ;;  %v3134_v20 = vld [vmem:[%s4314_s1 + $0x48] sm:$0xff]   ;;  %v3136_v23 = vld [vmem:[%s4314_s1 + $0x50] sm:$0xff]   ;;  %s4031_s25 = scalar_lea.vmem %s4316_s3, %s2752_s15 }
  0x5a   : > { %1408 = vmatprep.subr.bf16.mxu0 %v3459_v0  ;;  %1697 = vmatprep.subr.bf16.mxu1 %v3459_v0  ;;  %v3150_v19 = vld [vmem:[%s3620_s11 + $0x4] ss:$16 sps:$4 sm:$0xff]   ;;  %v3153_v21 = vld [vmem:[%s3620_s11 + $0xc] ss:$16 sps:$4 sm:$0xff]   ;;  %v3148_v35 = vld [vmem:[%s3620_s11] ss:$16 sps:$4 sm:$0xff]  }
  0x5b   : > { %v3135_v22 = vld [vmem:[%s4314_s1 + $0xc8] sm:$0xff]   ;;  %1436 = vmatprep.mubr.bf16.mxu0 %v3150_v19  ;;  %1725 = vmatprep.mubr.bf16.mxu1 %v3153_v21  ;;  %v3137_v24 = vld [vmem:[%s4314_s1 + $0xd0] sm:$0xff]   ;;  %v3138_v25 = vld [vmem:[%s4314_s1 + $0x58] sm:$0xff]  }
  0x5c   : > { %v3139_v26 = vld [vmem:[%s4314_s1 + $0xd8] sm:$0xff]   ;;  %v3140_v27 = vld [vmem:[%s4314_s1 + $0x60] sm:$0xff]   ;;  %v3142_v29 = vld [vmem:[%s4314_s1 + $0x68] sm:$0xff]  }
  0x5d   : > { %1409 = vmatpush1.bf16.msra.mxu0 %v3120_v5  ;;  %1698 = vmatpush1.bf16.msra.mxu1 %v3121_v6  ;;  %v3141_v28 = vld [vmem:[%s4314_s1 + $0xe0] sm:$0xff]   ;;  %v3143_v30 = vld [vmem:[%s4314_s1 + $0xe8] sm:$0xff]   ;;  %v3144_v31 = vld [vmem:[%s4314_s1 + $0x70] sm:$0xff]  }
  0x5e   : > { %1410 = vmatprep.subr.bf16.mxu0 %v3459_v0  ;;  %1699 = vmatprep.subr.bf16.mxu1 %v3459_v0  ;;  %v3145_v32 = vld [vmem:[%s4314_s1 + $0xf0] sm:$0xff]   ;;  %v3146_v33 = vld [vmem:[%s4314_s1 + $0x78] sm:$0xff]  }
  0x5f   : > { %v3147_v34 = vld [vmem:[%s4314_s1 + $0xf8] sm:$0xff]   ;;  %v3154_v37 = vld [vmem:[%s3620_s11 + $0x24] ss:$16 sps:$4 sm:$0xff]   ;;  %v3158_v39 = vld [vmem:[%s3620_s11 + $0x20] ss:$16 sps:$4 sm:$0xff]  }
  0x60   : > { %v3151_v36 = vld [vmem:[%s3620_s11 + $0x8] ss:$16 sps:$4 sm:$0xff]   ;;  %v3156_v38 = vld [vmem:[%s3620_s11 + $0x2c] ss:$16 sps:$4 sm:$0xff]   ;;  %v3160_v41 = vld [vmem:[%s3620_s11 + $0x44] ss:$16 sps:$4 sm:$0xff]  }
  0x61   : > { %1411 = vmatpush1.bf16.msra.mxu0 %v3122_v7  ;;  %1700 = vmatpush1.bf16.msra.mxu1 %v3123_v8  ;;  %v3159_v40 = vld [vmem:[%s3620_s11 + $0x28] ss:$16 sps:$4 sm:$0xff]   ;;  %v3162_v42 = vld [vmem:[%s3620_s11 + $0x4c] ss:$16 sps:$4 sm:$0xff]   ;;  %v3164_v43 = vld [vmem:[%s3620_s11 + $0x40] ss:$16 sps:$4 sm:$0xff]  }
  0x62   : > { %1412 = vmatprep.subr.bf16.mxu0 %v3459_v0  ;;  %1701 = vmatprep.subr.bf16.mxu1 %v3459_v0  ;;  %v3165_v44 = vld [vmem:[%s3620_s11 + $0x48] ss:$16 sps:$4 sm:$0xff]   ;;  %v3166_v45 = vld [vmem:[%s3620_s11 + $0x64] ss:$16 sps:$4 sm:$0xff]   ;;  %v3168_v46 = vld [vmem:[%s3620_s11 + $0x6c] ss:$16 sps:$4 sm:$0xff]  }
  0x63   : > { %v3170_v47 = vld [vmem:[%s3620_s11 + $0x60] ss:$16 sps:$4 sm:$0xff]   ;;  %v3171_v48 = vld [vmem:[%s3620_s11 + $0x68] ss:$16 sps:$4 sm:$0xff]   ;;  %v3172_v49 = vld [vmem:[%s3620_s11 + $0x84] ss:$16 sps:$4 sm:$0xff]  }
  0x64   : > { %v3174_v50 = vld [vmem:[%s3620_s11 + $0x8c] ss:$16 sps:$4 sm:$0xff]   ;;  %v3176_v51 = vld [vmem:[%s3620_s11 + $0x80] ss:$16 sps:$4 sm:$0xff]   ;;  %v3177_v52 = vld [vmem:[%s3620_s11 + $0x88] ss:$16 sps:$4 sm:$0xff]  }
  0x65   : > { %1413 = vmatpush1.bf16.msra.mxu0 %v3124_v9  ;;  %1702 = vmatpush1.bf16.msra.mxu1 %v3125_v10  ;;  %v3178_v53 = vld [vmem:[%s3620_s11 + $0xa4] ss:$16 sps:$4 sm:$0xff]   ;;  %v3180_v54 = vld [vmem:[%s3620_s11 + $0xac] ss:$16 sps:$4 sm:$0xff]   ;;  %v3182_v55 = vld [vmem:[%s3620_s11 + $0xa0] ss:$16 sps:$4 sm:$0xff]  }
  0x66   : > { %1414 = vmatprep.subr.bf16.mxu0 %v3459_v0  ;;  %1703 = vmatprep.subr.bf16.mxu1 %v3459_v0  ;;  %v3183_v56 = vld [vmem:[%s3620_s11 + $0xa8] ss:$16 sps:$4 sm:$0xff]   ;;  %v3184_v57 = vld [vmem:[%s3620_s11 + $0xc4] ss:$16 sps:$4 sm:$0xff]   ;;  %v3186_v58 = vld [vmem:[%s3620_s11 + $0xcc] ss:$16 sps:$4 sm:$0xff]  }
  0x67   : > { %v3188_v59 = vld [vmem:[%s3620_s11 + $0xc0] ss:$16 sps:$4 sm:$0xff]   ;;  %v3189_v60 = vld [vmem:[%s3620_s11 + $0xc8] ss:$16 sps:$4 sm:$0xff]   ;;  %v3190_v61 = vld [vmem:[%s3620_s11 + $0xe4] ss:$16 sps:$4 sm:$0xff]  }
  0x68   : > { %v3192_v62 = vld [vmem:[%s3620_s11 + $0xec] ss:$16 sps:$4 sm:$0xff]   ;;  %v3194_v63 = vld [vmem:[%s3620_s11 + $0xe0] ss:$16 sps:$4 sm:$0xff]   ;;  %v3196_v1 = vld [vmem:[%s3620_s11 + $0x104] ss:$16 sps:$4 sm:$0xff]  }
  0x69   : > { %1415 = vmatpush1.bf16.msra.mxu0 %v3126_v11  ;;  %1704 = vmatpush1.bf16.msra.mxu1 %v3127_v12  ;;  %v3198_v2 = vld [vmem:[%s3620_s11 + $0x10c] ss:$16 sps:$4 sm:$0xff]   ;;  %v3200_v3 = vld [vmem:[%s3620_s11 + $0x100] ss:$16 sps:$4 sm:$0xff]   ;;  %v3201_v4 = vld [vmem:[%s3620_s11 + $0x108] ss:$16 sps:$4 sm:$0xff]  }
  0x6a   : > { %1416 = vmatprep.subr.bf16.mxu0 %v3459_v0  ;;  %1705 = vmatprep.subr.bf16.mxu1 %v3459_v0  ;;  %v3202_v5 = vld [vmem:[%s3620_s11 + $0x124] ss:$16 sps:$4 sm:$0xff]   ;;  %v3204_v6 = vld [vmem:[%s3620_s11 + $0x12c] ss:$16 sps:$4 sm:$0xff]   ;;  %v3206_v7 = vld [vmem:[%s3620_s11 + $0x120] ss:$16 sps:$4 sm:$0xff]  }
  0x6b   : > { %v3207_v8 = vld [vmem:[%s3620_s11 + $0x128] ss:$16 sps:$4 sm:$0xff]   ;;  %v3208_v9 = vld [vmem:[%s3620_s11 + $0x144] ss:$16 sps:$4 sm:$0xff]   ;;  %v3210_v10 = vld [vmem:[%s3620_s11 + $0x14c] ss:$16 sps:$4 sm:$0xff]  }
  0x6c   : > { %v3801_v11 = vld [vmem:[%s3620_s11 + $0x140] ss:$16 sps:$4 sm:$0xff]   ;;  %v3804_v12 = vld [vmem:[%s3620_s11 + $0x148] ss:$16 sps:$4 sm:$0xff]   ;;  %v3222_v19 = vld [vmem:[%s3620_s11 + $0x18c] ss:$16 sps:$4 sm:$0xff]  }
  0x6d   : > { %1417 = vmatpush1.bf16.msra.mxu0 %v3128_v13  ;;  %1706 = vmatpush1.bf16.msra.mxu1 %v3129_v14  ;;  %v3807_v13 = vld [vmem:[%s3620_s11 + $0x164] ss:$16 sps:$4 sm:$0xff]   ;;  %v3810_v14 = vld [vmem:[%s3620_s11 + $0x16c] ss:$16 sps:$4 sm:$0xff]   ;;  %v3225_v21 = vld [vmem:[%s3620_s11 + $0x188] ss:$16 sps:$4 sm:$0xff]  }
  0x6e   : > { %1418 = vmatprep.subr.bf16.mxu0 %v3459_v0  ;;  %1707 = vmatprep.subr.bf16.mxu1 %v3459_v0 }
  0x71   : > { %1419 = vmatpush1.bf16.msra.mxu0 %v3130_v15  ;;  %1708 = vmatpush1.bf16.msra.mxu1 %v3131_v16  ;;  %v3460_v15 = vmov 0.0   ;;  %v3218_v16 = vld [vmem:[%s3620_s11 + $0x160] ss:$16 sps:$4 sm:$0xff]  }
  0x72   : > { %1420 = vmatprep.subr.bf16.mxu0 %v3459_v0  ;;  %1709 = vmatprep.subr.bf16.mxu1 %v3459_v0  ;;  %252 = vst.msk [vmem:[#allocation2] sm:$0xff] %vm251_vm0, %v3460_v15  ;;  %253 = vst.msk [vmem:[#allocation2 + $0x8] sm:$0xff] %vm251_vm0, %v3460_v15 }
  0x73   : > { %254 = vst.msk [vmem:[#allocation2 + $0x10] sm:$0xff] %vm251_vm0, %v3460_v15  ;;  %255 = vst.msk [vmem:[#allocation2 + $0x18] sm:$0xff] %vm251_vm0, %v3460_v15 }
  0x74   : > { %256 = vst.msk [vmem:[#allocation2 + $0x20] sm:$0xff] %vm251_vm0, %v3460_v15  ;;  %257 = vst.msk [vmem:[#allocation2 + $0x28] sm:$0xff] %vm251_vm0, %v3460_v15 }
  0x75   : > { %1421 = vmatpush1.bf16.msra.mxu0 %v3132_v17  ;;  %1710 = vmatpush1.bf16.msra.mxu1 %v3133_v18  ;;  %258 = vst.msk [vmem:[#allocation2 + $0x30] sm:$0xff] %vm251_vm0, %v3460_v15  ;;  %259 = vst.msk [vmem:[#allocation2 + $0x38] sm:$0xff] %vm251_vm0, %v3460_v15  ;;  %v3219_v17 = vld [vmem:[%s3620_s11 + $0x168] ss:$16 sps:$4 sm:$0xff]   ;;  %v3220_v18 = vld [vmem:[%s3620_s11 + $0x184] ss:$16 sps:$4 sm:$0xff]  }
  0x76   : > { %1422 = vmatprep.subr.bf16.mxu0 %v3459_v0  ;;  %1711 = vmatprep.subr.bf16.mxu1 %v3459_v0  ;;  %260 = vst.msk [vmem:[#allocation2 + $0x40] sm:$0xff] %vm251_vm0, %v3460_v15  ;;  %261 = vst.msk [vmem:[#allocation2 + $0x48] sm:$0xff] %vm251_vm0, %v3460_v15 }
  0x77   : > { %262 = vst.msk [vmem:[#allocation2 + $0x50] sm:$0xff] %vm251_vm0, %v3460_v15  ;;  %263 = vst.msk [vmem:[#allocation2 + $0x58] sm:$0xff] %vm251_vm0, %v3460_v15 }
  0x78   : > { %264 = vst.msk [vmem:[#allocation2 + $0x60] sm:$0xff] %vm251_vm0, %v3460_v15  ;;  %265 = vst.msk [vmem:[#allocation2 + $0x68] sm:$0xff] %vm251_vm0, %v3460_v15 }
  0x79   : > { %1423 = vmatpush1.bf16.msra.mxu0 %v3134_v20  ;;  %1712 = vmatpush1.bf16.msra.mxu1 %v3135_v22  ;;  %266 = vst.msk [vmem:[#allocation2 + $0x70] sm:$0xff] %vm251_vm0, %v3460_v15  ;;  %267 = vst.msk [vmem:[#allocation2 + $0x78] sm:$0xff] %vm251_vm0, %v3460_v15  ;;  %v3224_v20 = vld [vmem:[%s3620_s11 + $0x180] ss:$16 sps:$4 sm:$0xff]   ;;  %v3226_v22 = vld [vmem:[%s3620_s11 + $0x1a4] ss:$16 sps:$4 sm:$0xff]  }
  0x7a   : > { %1424 = vmatprep.subr.bf16.mxu0 %v3459_v0  ;;  %1713 = vmatprep.subr.bf16.mxu1 %v3459_v0  ;;  %268 = vst.msk [vmem:[#allocation2 + $0x80] sm:$0xff] %vm251_vm0, %v3460_v15  ;;  %269 = vst.msk [vmem:[#allocation2 + $0x88] sm:$0xff] %vm251_vm0, %v3460_v15 }
  0x7b   : > { %270 = vst.msk [vmem:[#allocation2 + $0x90] sm:$0xff] %vm251_vm0, %v3460_v15  ;;  %271 = vst.msk [vmem:[#allocation2 + $0x98] sm:$0xff] %vm251_vm0, %v3460_v15 }
  0x7c   : > { %272 = vst.msk [vmem:[#allocation2 + $0xa0] sm:$0xff] %vm251_vm0, %v3460_v15  ;;  %273 = vst.msk [vmem:[#allocation2 + $0xa8] sm:$0xff] %vm251_vm0, %v3460_v15 }
  0x7d   : > { %1425 = vmatpush1.bf16.msra.mxu0 %v3136_v23  ;;  %1714 = vmatpush1.bf16.msra.mxu1 %v3137_v24  ;;  %274 = vst.msk [vmem:[#allocation2 + $0xb0] sm:$0xff] %vm251_vm0, %v3460_v15  ;;  %275 = vst.msk [vmem:[#allocation2 + $0xb8] sm:$0xff] %vm251_vm0, %v3460_v15  ;;  %v3228_v23 = vld [vmem:[%s3620_s11 + $0x1ac] ss:$16 sps:$4 sm:$0xff]   ;;  %v3230_v24 = vld [vmem:[%s3620_s11 + $0x1a0] ss:$16 sps:$4 sm:$0xff]  }
  0x7e   : > { %1426 = vmatprep.subr.bf16.mxu0 %v3459_v0  ;;  %1715 = vmatprep.subr.bf16.mxu1 %v3459_v0  ;;  %276 = vst.msk [vmem:[#allocation2 + $0xc0] sm:$0xff] %vm251_vm0, %v3460_v15  ;;  %277 = vst.msk [vmem:[#allocation2 + $0xc8] sm:$0xff] %vm251_vm0, %v3460_v15 }
  0x7f   : > { %278 = vst.msk [vmem:[#allocation2 + $0xd0] sm:$0xff] %vm251_vm0, %v3460_v15  ;;  %279 = vst.msk [vmem:[#allocation2 + $0xd8] sm:$0xff] %vm251_vm0, %v3460_v15 }
  0x80   : > { %280 = vst.msk [vmem:[#allocation2 + $0xe0] sm:$0xff] %vm251_vm0, %v3460_v15  ;;  %281 = vst.msk [vmem:[#allocation2 + $0xe8] sm:$0xff] %vm251_vm0, %v3460_v15 }
  0x81   : > { %1427 = vmatpush1.bf16.msra.mxu0 %v3138_v25  ;;  %1716 = vmatpush1.bf16.msra.mxu1 %v3139_v26  ;;  %282 = vst.msk [vmem:[#allocation2 + $0xf0] sm:$0xff] %vm251_vm0, %v3460_v15  ;;  %283 = vst.msk [vmem:[#allocation2 + $0xf8] sm:$0xff] %vm251_vm0, %v3460_v15  ;;  %v3231_v25 = vld [vmem:[%s3620_s11 + $0x1a8] ss:$16 sps:$4 sm:$0xff]   ;;  %v3232_v26 = vld [vmem:[%s3620_s11 + $0x1c4] ss:$16 sps:$4 sm:$0xff]  }
  0x82   : > { %1428 = vmatprep.subr.bf16.mxu0 %v3459_v0  ;;  %1717 = vmatprep.subr.bf16.mxu1 %v3459_v0  ;;  %284 = vst.msk [vmem:[#allocation2 + $0x100] sm:$0xff] %vm251_vm0, %v3460_v15  ;;  %285 = vst.msk [vmem:[#allocation2 + $0x108] sm:$0xff] %vm251_vm0, %v3460_v15 }
  0x83   : > { %286 = vst.msk [vmem:[#allocation2 + $0x110] sm:$0xff] %vm251_vm0, %v3460_v15  ;;  %287 = vst.msk [vmem:[#allocation2 + $0x118] sm:$0xff] %vm251_vm0, %v3460_v15 }
  0x84   : > { %288 = vst.msk [vmem:[#allocation2 + $0x120] sm:$0xff] %vm251_vm0, %v3460_v15  ;;  %289 = vst.msk [vmem:[#allocation2 + $0x128] sm:$0xff] %vm251_vm0, %v3460_v15 }
  0x85   : > { %1429 = vmatpush1.bf16.msra.mxu0 %v3140_v27  ;;  %1718 = vmatpush1.bf16.msra.mxu1 %v3141_v28  ;;  %290 = vst.msk [vmem:[#allocation2 + $0x130] sm:$0xff] %vm251_vm0, %v3460_v15  ;;  %291 = vst.msk [vmem:[#allocation2 + $0x138] sm:$0xff] %vm251_vm0, %v3460_v15  ;;  %v3234_v27 = vld [vmem:[%s3620_s11 + $0x1cc] ss:$16 sps:$4 sm:$0xff]   ;;  %v3236_v28 = vld [vmem:[%s3620_s11 + $0x1c0] ss:$16 sps:$4 sm:$0xff]  }
  0x86   : > { %1430 = vmatprep.subr.bf16.mxu0 %v3459_v0  ;;  %1719 = vmatprep.subr.bf16.mxu1 %v3459_v0  ;;  %292 = vst.msk [vmem:[#allocation2 + $0x140] sm:$0xff] %vm251_vm0, %v3460_v15  ;;  %293 = vst.msk [vmem:[#allocation2 + $0x148] sm:$0xff] %vm251_vm0, %v3460_v15 }
  0x87   : > { %294 = vst.msk [vmem:[#allocation2 + $0x150] sm:$0xff] %vm251_vm0, %v3460_v15  ;;  %295 = vst.msk [vmem:[#allocation2 + $0x158] sm:$0xff] %vm251_vm0, %v3460_v15 }
  0x88   : > { %296 = vst.msk [vmem:[#allocation2 + $0x160] sm:$0xff] %vm251_vm0, %v3460_v15  ;;  %297 = vst.msk [vmem:[#allocation2 + $0x168] sm:$0xff] %vm251_vm0, %v3460_v15 }
  0x89   : > { %1431 = vmatpush1.bf16.msra.mxu0 %v3142_v29  ;;  %1720 = vmatpush1.bf16.msra.mxu1 %v3143_v30  ;;  %298 = vst.msk [vmem:[#allocation2 + $0x170] sm:$0xff] %vm251_vm0, %v3460_v15  ;;  %299 = vst.msk [vmem:[#allocation2 + $0x178] sm:$0xff] %vm251_vm0, %v3460_v15  ;;  %v3237_v29 = vld [vmem:[%s3620_s11 + $0x1c8] ss:$16 sps:$4 sm:$0xff]   ;;  %v3238_v30 = vld [vmem:[%s3620_s11 + $0x1e4] ss:$16 sps:$4 sm:$0xff]  }
  0x8a   : > { %1432 = vmatprep.subr.bf16.mxu0 %v3459_v0  ;;  %1721 = vmatprep.subr.bf16.mxu1 %v3459_v0  ;;  %300 = vst.msk [vmem:[#allocation2 + $0x180] sm:$0xff] %vm251_vm0, %v3460_v15  ;;  %301 = vst.msk [vmem:[#allocation2 + $0x188] sm:$0xff] %vm251_vm0, %v3460_v15 }
  0x8b   : > { %302 = vst.msk [vmem:[#allocation2 + $0x190] sm:$0xff] %vm251_vm0, %v3460_v15  ;;  %303 = vst.msk [vmem:[#allocation2 + $0x198] sm:$0xff] %vm251_vm0, %v3460_v15 }
  0x8c   : > { %304 = vst.msk [vmem:[#allocation2 + $0x1a0] sm:$0xff] %vm251_vm0, %v3460_v15  ;;  %305 = vst.msk [vmem:[#allocation2 + $0x1a8] sm:$0xff] %vm251_vm0, %v3460_v15 }
  0x8d   : > { %1433 = vmatpush1.bf16.msra.mxu0 %v3144_v31  ;;  %1722 = vmatpush1.bf16.msra.mxu1 %v3145_v32  ;;  %306 = vst.msk [vmem:[#allocation2 + $0x1b0] sm:$0xff] %vm251_vm0, %v3460_v15  ;;  %307 = vst.msk [vmem:[#allocation2 + $0x1b8] sm:$0xff] %vm251_vm0, %v3460_v15  ;;  %v3240_v31 = vld [vmem:[%s3620_s11 + $0x1ec] ss:$16 sps:$4 sm:$0xff]   ;;  %v3242_v32 = vld [vmem:[%s3620_s11 + $0x1e0] ss:$16 sps:$4 sm:$0xff]  }
  0x8e   : > { %1434 = vmatprep.subr.bf16.mxu0 %v3459_v0  ;;  %1723 = vmatprep.subr.bf16.mxu1 %v3459_v0  ;;  %v3195_v0 = vld [vmem:[%s3620_s11 + $0xe8] ss:$16 sps:$4 sm:$0xff]   ;;  %308 = vst.msk [vmem:[#allocation2 + $0x1c0] sm:$0xff] %vm251_vm0, %v3460_v15  ;;  %309 = vst.msk [vmem:[#allocation2 + $0x1c8] sm:$0xff] %vm251_vm0, %v3460_v15 }
  0x8f   : > { %310 = vst.msk [vmem:[#allocation2 + $0x1d0] sm:$0xff] %vm251_vm0, %v3460_v15  ;;  %311 = vst.msk [vmem:[#allocation2 + $0x1d8] sm:$0xff] %vm251_vm0, %v3460_v15 }
  0x90   : > { %312 = vst.msk [vmem:[#allocation2 + $0x1e0] sm:$0xff] %vm251_vm0, %v3460_v15  ;;  %313 = vst.msk [vmem:[#allocation2 + $0x1e8] sm:$0xff] %vm251_vm0, %v3460_v15 }
  0x91   : > { %1435 = vmatpush1.bf16.msra.mxu0 %v3146_v33  ;;  %1724 = vmatpush1.bf16.msra.mxu1 %v3147_v34  ;;  %314 = vst.msk [vmem:[#allocation2 + $0x1f0] sm:$0xff] %vm251_vm0, %v3460_v15  ;;  %315 = vst.msk [vmem:[#allocation2 + $0x1f8] sm:$0xff] %vm251_vm0, %v3460_v15  ;;  %v3243_v33 = vld [vmem:[%s3620_s11 + $0x1e8] ss:$16 sps:$4 sm:$0xff]   ;;  %v3244_v34 = vld [vmem:[%s3620_s11 + $0x204] ss:$16 sps:$4 sm:$0xff]  }
  0x92   : > { %v3312_v15 = vld [vmem:[%s3620_s11 + $0x36c] ss:$16 sps:$4 sm:$0xff]  }
  0x94   : > { %1437 = vmatmul.mubr.bf16.vlgmr.msra.gmra.mrb[0].mxu0 %v3148_v35  ;;  %1726 = vmatmul.mubr.bf16.vlgmr.msra.gmra.mrb[0].mxu1 %v3151_v36  ;;  %v3246_v35 = vld [vmem:[%s3620_s11 + $0x20c] ss:$16 sps:$4 sm:$0xff]   ;;  %v3248_v36 = vld [vmem:[%s3620_s11 + $0x200] ss:$16 sps:$4 sm:$0xff]  }
  0x95   : > { %1444 = vmatprep.mubr.bf16.mxu0 %v3154_v37  ;;  %1733 = vmatprep.mubr.bf16.mxu1 %v3156_v38  ;;  %v3249_v37 = vld [vmem:[%s3620_s11 + $0x208] ss:$16 sps:$4 sm:$0xff]   ;;  %v3250_v38 = vld [vmem:[%s3620_s11 + $0x224] ss:$16 sps:$4 sm:$0xff]  }
  0x9c   : > { %1445 = vmatmul.mubr.bf16.gmra.mrb[4].mxu0 %v3158_v39  ;;  %1734 = vmatmul.mubr.bf16.gmra.mrb[4].mxu1 %v3159_v40  ;;  %v3252_v39 = vld [vmem:[%s3620_s11 + $0x22c] ss:$16 sps:$4 sm:$0xff]   ;;  %v3254_v40 = vld [vmem:[%s3620_s11 + $0x220] ss:$16 sps:$4 sm:$0xff]  }
  0x9d   : > { %1452 = vmatprep.mubr.bf16.mxu0 %v3160_v41  ;;  %1741 = vmatprep.mubr.bf16.mxu1 %v3162_v42  ;;  %v3255_v41 = vld [vmem:[%s3620_s11 + $0x228] ss:$16 sps:$4 sm:$0xff]   ;;  %v3256_v42 = vld [vmem:[%s3620_s11 + $0x244] ss:$16 sps:$4 sm:$0xff]  }
  0xa4   : > { %1453 = vmatmul.mubr.bf16.gmra.mrb[8].mxu0 %v3164_v43  ;;  %1742 = vmatmul.mubr.bf16.gmra.mrb[8].mxu1 %v3165_v44  ;;  %v3258_v43 = vld [vmem:[%s3620_s11 + $0x24c] ss:$16 sps:$4 sm:$0xff]   ;;  %v3260_v44 = vld [vmem:[%s3620_s11 + $0x240] ss:$16 sps:$4 sm:$0xff]  }
  0xa5   : > { %1460 = vmatprep.mubr.bf16.mxu0 %v3166_v45  ;;  %1749 = vmatprep.mubr.bf16.mxu1 %v3168_v46  ;;  %v3261_v45 = vld [vmem:[%s3620_s11 + $0x248] ss:$16 sps:$4 sm:$0xff]   ;;  %v3262_v46 = vld [vmem:[%s3620_s11 + $0x264] ss:$16 sps:$4 sm:$0xff]  }
  0xac   : > { %1461 = vmatmul.mubr.bf16.gmra.mrb[12].mxu0 %v3170_v47  ;;  %1750 = vmatmul.mubr.bf16.gmra.mrb[12].mxu1 %v3171_v48  ;;  %v3264_v47 = vld [vmem:[%s3620_s11 + $0x26c] ss:$16 sps:$4 sm:$0xff]   ;;  %v3266_v48 = vld [vmem:[%s3620_s11 + $0x260] ss:$16 sps:$4 sm:$0xff]  }
  0xad   : > { %1468 = vmatprep.mubr.bf16.mxu0 %v3172_v49  ;;  %1757 = vmatprep.mubr.bf16.mxu1 %v3174_v50  ;;  %v3267_v49 = vld [vmem:[%s3620_s11 + $0x268] ss:$16 sps:$4 sm:$0xff]   ;;  %v3268_v50 = vld [vmem:[%s3620_s11 + $0x284] ss:$16 sps:$4 sm:$0xff]  }
  0xb4   : > { %1469 = vmatmul.mubr.bf16.gmra.mrb[16].mxu0 %v3176_v51  ;;  %1758 = vmatmul.mubr.bf16.gmra.mrb[16].mxu1 %v3177_v52  ;;  %v3270_v51 = vld [vmem:[%s3620_s11 + $0x28c] ss:$16 sps:$4 sm:$0xff]   ;;  %v3272_v52 = vld [vmem:[%s3620_s11 + $0x280] ss:$16 sps:$4 sm:$0xff]  }
  0xb5   : > { %1476 = vmatprep.mubr.bf16.mxu0 %v3178_v53  ;;  %1765 = vmatprep.mubr.bf16.mxu1 %v3180_v54  ;;  %v3273_v53 = vld [vmem:[%s3620_s11 + $0x288] ss:$16 sps:$4 sm:$0xff]   ;;  %v3274_v54 = vld [vmem:[%s3620_s11 + $0x2a4] ss:$16 sps:$4 sm:$0xff]  }
  0xbc   : > { %1477 = vmatmul.mubr.bf16.gmra.mrb[20].mxu0 %v3182_v55  ;;  %1766 = vmatmul.mubr.bf16.gmra.mrb[20].mxu1 %v3183_v56  ;;  %v3276_v55 = vld [vmem:[%s3620_s11 + $0x2ac] ss:$16 sps:$4 sm:$0xff]   ;;  %v3278_v56 = vld [vmem:[%s3620_s11 + $0x2a0] ss:$16 sps:$4 sm:$0xff]  }
  0xbd   : > { %1484 = vmatprep.mubr.bf16.mxu0 %v3184_v57  ;;  %1773 = vmatprep.mubr.bf16.mxu1 %v3186_v58  ;;  %v3279_v57 = vld [vmem:[%s3620_s11 + $0x2a8] ss:$16 sps:$4 sm:$0xff]   ;;  %v3280_v58 = vld [vmem:[%s3620_s11 + $0x2c4] ss:$16 sps:$4 sm:$0xff]  }
  0xc4   : > { %1485 = vmatmul.mubr.bf16.gmra.mrb[24].mxu0 %v3188_v59  ;;  %1774 = vmatmul.mubr.bf16.gmra.mrb[24].mxu1 %v3189_v60  ;;  %v3282_v59 = vld [vmem:[%s3620_s11 + $0x2cc] ss:$16 sps:$4 sm:$0xff]   ;;  %v3284_v60 = vld [vmem:[%s3620_s11 + $0x2c0] ss:$16 sps:$4 sm:$0xff]  }
  0xc5   : > { %1492 = vmatprep.mubr.bf16.mxu0 %v3190_v61  ;;  %1781 = vmatprep.mubr.bf16.mxu1 %v3192_v62  ;;  %v3285_v61 = vld [vmem:[%s3620_s11 + $0x2c8] ss:$16 sps:$4 sm:$0xff]   ;;  %v3286_v62 = vld [vmem:[%s3620_s11 + $0x2e4] ss:$16 sps:$4 sm:$0xff]  }
  0xcc   : > { %1493 = vmatmul.mubr.bf16.gmra.mrb[28].mxu0 %v3194_v63  ;;  %1782 = vmatmul.mubr.bf16.gmra.mrb[28].mxu1 %v3195_v0  ;;  %v3288_v63 = vld [vmem:[%s3620_s11 + $0x2ec] ss:$16 sps:$4 sm:$0xff]   ;;  %v3290_v0 = vld [vmem:[%s3620_s11 + $0x2e0] ss:$16 sps:$4 sm:$0xff]  }
  0xcd   : > { %1500 = vmatprep.mubr.bf16.mxu0 %v3196_v1  ;;  %1789 = vmatprep.mubr.bf16.mxu1 %v3198_v2  ;;  %v3291_v1 = vld [vmem:[%s3620_s11 + $0x2e8] ss:$16 sps:$4 sm:$0xff]   ;;  %v3292_v2 = vld [vmem:[%s3620_s11 + $0x304] ss:$16 sps:$4 sm:$0xff]  }
  0xd4   : > { %1501 = vmatmul.mubr.bf16.gmra.mrb[32].mxu0 %v3200_v3  ;;  %1790 = vmatmul.mubr.bf16.gmra.mrb[32].mxu1 %v3201_v4  ;;  %v3294_v3 = vld [vmem:[%s3620_s11 + $0x30c] ss:$16 sps:$4 sm:$0xff]   ;;  %v3296_v4 = vld [vmem:[%s3620_s11 + $0x300] ss:$16 sps:$4 sm:$0xff]  }
  0xd5   : > { %1508 = vmatprep.mubr.bf16.mxu0 %v3202_v5  ;;  %1797 = vmatprep.mubr.bf16.mxu1 %v3204_v6  ;;  %v3297_v5 = vld [vmem:[%s3620_s11 + $0x308] ss:$16 sps:$4 sm:$0xff]   ;;  %v3298_v6 = vld [vmem:[%s3620_s11 + $0x324] ss:$16 sps:$4 sm:$0xff]  }
  0xdc   : > { %1509 = vmatmul.mubr.bf16.gmra.mrb[36].mxu0 %v3206_v7  ;;  %1798 = vmatmul.mubr.bf16.gmra.mrb[36].mxu1 %v3207_v8  ;;  %v3300_v7 = vld [vmem:[%s3620_s11 + $0x32c] ss:$16 sps:$4 sm:$0xff]   ;;  %v3302_v8 = vld [vmem:[%s3620_s11 + $0x320] ss:$16 sps:$4 sm:$0xff]  }
  0xdd   : > { %1516 = vmatprep.mubr.bf16.mxu0 %v3208_v9  ;;  %1805 = vmatprep.mubr.bf16.mxu1 %v3210_v10  ;;  %v3303_v9 = vld [vmem:[%s3620_s11 + $0x328] ss:$16 sps:$4 sm:$0xff]   ;;  %v3304_v10 = vld [vmem:[%s3620_s11 + $0x344] ss:$16 sps:$4 sm:$0xff]  }
  0xe4   : > { %1517 = vmatmul.mubr.bf16.gmra.mrb[40].mxu0 %v3801_v11  ;;  %1806 = vmatmul.mubr.bf16.gmra.mrb[40].mxu1 %v3804_v12  ;;  %v3306_v11 = vld [vmem:[%s3620_s11 + $0x34c] ss:$16 sps:$4 sm:$0xff]   ;;  %v3308_v12 = vld [vmem:[%s3620_s11 + $0x340] ss:$16 sps:$4 sm:$0xff]  }
  0xe5   : > { %1524 = vmatprep.mubr.bf16.mxu0 %v3807_v13  ;;  %1813 = vmatprep.mubr.bf16.mxu1 %v3810_v14  ;;  %v3309_v13 = vld [vmem:[%s3620_s11 + $0x348] ss:$16 sps:$4 sm:$0xff]   ;;  %v3310_v14 = vld [vmem:[%s3620_s11 + $0x364] ss:$16 sps:$4 sm:$0xff]  }
  0xec   : > { %1525 = vmatmul.mubr.bf16.gmra.mrb[44].mxu0 %v3218_v16  ;;  %1814 = vmatmul.mubr.bf16.gmra.mrb[44].mxu1 %v3219_v17  ;;  %v316_v17 = vld [vmem:[#allocation2] sm:$0xff] }
  0xed   : > { %1532 = vmatprep.mubr.bf16.mxu0 %v3220_v18  ;;  %1821 = vmatprep.mubr.bf16.mxu1 %v3222_v19 }
  0xf4   : > { %1533 = vmatmul.mubr.bf16.gmra.mrb[48].mxu0 %v3224_v20  ;;  %1822 = vmatmul.mubr.bf16.gmra.mrb[48].mxu1 %v3225_v21  ;;  %v3314_v20 = vld [vmem:[%s3620_s11 + $0x360] ss:$16 sps:$4 sm:$0xff]  }
  0xf5   : > { %1540 = vmatprep.mubr.bf16.mxu0 %v3226_v22  ;;  %1829 = vmatprep.mubr.bf16.mxu1 %v3228_v23 }
  0xfc   : > { %1541 = vmatmul.mubr.bf16.gmra.mrb[52].mxu0 %v3230_v24  ;;  %1830 = vmatmul.mubr.bf16.gmra.mrb[52].mxu1 %v3231_v25  ;;  %v3315_v24 = vld [vmem:[%s3620_s11 + $0x368] ss:$16 sps:$4 sm:$0xff]   ;;  %v3316_v25 = vld [vmem:[%s3620_s11 + $0x384] ss:$16 sps:$4 sm:$0xff]  }
  0xfd   : > { %1548 = vmatprep.mubr.bf16.mxu0 %v3232_v26  ;;  %1837 = vmatprep.mubr.bf16.mxu1 %v3234_v27  ;;  %v317_v26 = vld [vmem:[#allocation2 + $0x8] sm:$0xff] }
 0x104   : > { %1549 = vmatmul.mubr.bf16.gmra.mrb[56].mxu0 %v3236_v28  ;;  %1838 = vmatmul.mubr.bf16.gmra.mrb[56].mxu1 %v3237_v29  ;;  %v3318_v29 = vld [vmem:[%s3620_s11 + $0x38c] ss:$16 sps:$4 sm:$0xff]  }
 0x105   : > { %1556 = vmatprep.mubr.bf16.mxu0 %v3238_v30  ;;  %1845 = vmatprep.mubr.bf16.mxu1 %v3240_v31 }
 0x10c   : > { %1557 = vmatmul.mubr.bf16.gmra.mrb[60].mxu0 %v3242_v32  ;;  %1846 = vmatmul.mubr.bf16.gmra.mrb[60].mxu1 %v3243_v33 }
 0x10d   : > { %1564 = vmatprep.mubr.bf16.mxu0 %v3244_v34  ;;  %1853 = vmatprep.mubr.bf16.mxu1 %v3246_v35  ;;  %v318_v35 = vld [vmem:[#allocation2 + $0x10] sm:$0xff] }
 0x114   : > { %1565 = vmatmul.mubr.bf16.gmra.mrb[64].mxu0 %v3248_v36  ;;  %1854 = vmatmul.mubr.bf16.gmra.mrb[64].mxu1 %v3249_v37 }
 0x115   : > { %1572 = vmatprep.mubr.bf16.mxu0 %v3250_v38  ;;  %1861 = vmatprep.mubr.bf16.mxu1 %v3252_v39  ;;  %v3320_v38 = vld [vmem:[%s3620_s11 + $0x380] ss:$16 sps:$4 sm:$0xff]   ;;  %v3321_v39 = vld [vmem:[%s3620_s11 + $0x388] ss:$16 sps:$4 sm:$0xff]  }
 0x11c   : > { %1573 = vmatmul.mubr.bf16.gmra.mrb[68].mxu0 %v3254_v40  ;;  %1862 = vmatmul.mubr.bf16.gmra.mrb[68].mxu1 %v3255_v41  ;;  %v4019_v40 = vld [vmem:[#allocation5] ss:$0 sm:$0xff] }
 0x11d   : > { %1580 = vmatprep.mubr.bf16.mxu0 %v3256_v42  ;;  %1869 = vmatprep.mubr.bf16.mxu1 %v3258_v43 }
 0x124   : > { %1581 = vmatmul.mubr.bf16.gmra.mrb[72].mxu0 %v3260_v44  ;;  %1870 = vmatmul.mubr.bf16.gmra.mrb[72].mxu1 %v3261_v45  ;;  %v3322_v44 = vld [vmem:[%s3620_s11 + $0x3a4] ss:$16 sps:$4 sm:$0xff]   ;;  %v319_v45 = vld [vmem:[#allocation2 + $0x18] sm:$0xff] }
 0x125   : > { %1588 = vmatprep.mubr.bf16.mxu0 %v3262_v46  ;;  %1877 = vmatprep.mubr.bf16.mxu1 %v3264_v47 }
 0x12c   : > { %1589 = vmatmul.mubr.bf16.gmra.mrb[76].mxu0 %v3266_v48  ;;  %1878 = vmatmul.mubr.bf16.gmra.mrb[76].mxu1 %v3267_v49  ;;  %v3324_v48 = vld [vmem:[%s3620_s11 + $0x3ac] ss:$16 sps:$4 sm:$0xff]  }
 0x12d   : > { %1596 = vmatprep.mubr.bf16.mxu0 %v3268_v50  ;;  %1885 = vmatprep.mubr.bf16.mxu1 %v3270_v51 }
 0x134   : > { %1597 = vmatmul.mubr.bf16.gmra.mrb[80].mxu0 %v3272_v52  ;;  %1886 = vmatmul.mubr.bf16.gmra.mrb[80].mxu1 %v3273_v53 }
 0x135   : > { %1604 = vmatprep.mubr.bf16.mxu0 %v3274_v54  ;;  %1893 = vmatprep.mubr.bf16.mxu1 %v3276_v55 }
 0x13c   : > { %1605 = vmatmul.mubr.bf16.gmra.mrb[84].mxu0 %v3278_v56  ;;  %1894 = vmatmul.mubr.bf16.gmra.mrb[84].mxu1 %v3279_v57 }
 0x13d   : > { %1612 = vmatprep.mubr.bf16.mxu0 %v3280_v58  ;;  %1901 = vmatprep.mubr.bf16.mxu1 %v3282_v59  ;;  %v320_v59 = vld [vmem:[#allocation2 + $0x20] sm:$0xff] }
 0x144   : > { %1613 = vmatmul.mubr.bf16.gmra.mrb[88].mxu0 %v3284_v60  ;;  %1902 = vmatmul.mubr.bf16.gmra.mrb[88].mxu1 %v3285_v61 }
 0x145   : > { %1620 = vmatprep.mubr.bf16.mxu0 %v3286_v62  ;;  %1909 = vmatprep.mubr.bf16.mxu1 %v3288_v63  ;;  %v3326_v62 = vld [vmem:[%s3620_s11 + $0x3a0] ss:$16 sps:$4 sm:$0xff]   ;;  %v3327_v63 = vld [vmem:[%s3620_s11 + $0x3a8] ss:$16 sps:$4 sm:$0xff]  }
 0x14c   : > { %1621 = vmatmul.mubr.bf16.gmra.mrb[92].mxu0 %v3290_v0  ;;  %1910 = vmatmul.mubr.bf16.gmra.mrb[92].mxu1 %v3291_v1 }
 0x14d   : > { %1628 = vmatprep.mubr.bf16.mxu0 %v3292_v2  ;;  %1917 = vmatprep.mubr.bf16.mxu1 %v3294_v3 }
 0x154   : > { %1629 = vmatmul.mubr.bf16.gmra.mrb[96].mxu0 %v3296_v4  ;;  %1918 = vmatmul.mubr.bf16.gmra.mrb[96].mxu1 %v3297_v5  ;;  %v3328_v5 = vld [vmem:[%s3620_s11 + $0x3c4] ss:$16 sps:$4 sm:$0xff]  }
 0x155   : > { %1636 = vmatprep.mubr.bf16.mxu0 %v3298_v6  ;;  %1925 = vmatprep.mubr.bf16.mxu1 %v3300_v7  ;;  %v321_v6 = vld [vmem:[#allocation2 + $0x28] sm:$0xff] }
 0x15c   : > { %1637 = vmatmul.mubr.bf16.gmra.mrb[100].mxu0 %v3302_v8  ;;  %1926 = vmatmul.mubr.bf16.gmra.mrb[100].mxu1 %v3303_v9  ;;  %v3330_v9 = vld [vmem:[%s3620_s11 + $0x3cc] ss:$16 sps:$4 sm:$0xff]  }
 0x15d   : > { %1644 = vmatprep.mubr.bf16.mxu0 %v3304_v10  ;;  %1933 = vmatprep.mubr.bf16.mxu1 %v3306_v11 }
 0x164   : > { %1645 = vmatmul.mubr.bf16.gmra.mrb[104].mxu0 %v3308_v12  ;;  %1934 = vmatmul.mubr.bf16.gmra.mrb[104].mxu1 %v3309_v13 }
 0x165   : > { %1652 = vmatprep.mubr.bf16.mxu0 %v3310_v14  ;;  %1941 = vmatprep.mubr.bf16.mxu1 %v3312_v15 }
 0x167   : > { %v1438_v16 = vpop.f32.mrb[0].mxu0  ;;  %v1727_v18 = vpop.f32.mrb[0].mxu1 }
 0x168   : > { %v1440_v19 = vpop.f32.mrb[1].mxu0  ;;  %v1728_v21 = vadd.f32 %v1727_v18, %v1438_v16  ;;  %v1729_v22 = vpop.f32.mrb[1].mxu1 }
 0x169   : > { %v1441_v23 = vpop.f32.mrb[2].mxu0  ;;  %v1730_v27 = vpop.f32.mrb[2].mxu1 }
 0x16a   : > { %v1443_v28 = vpop.f32.mrb[3].mxu0  ;;  %v1982_v30 = vadd.f32 %v1728_v21, %v316_v17  ;;  %v1731_v31 = vadd.f32 %v1730_v27, %v1441_v23  ;;  %v1732_v32 = vpop.f32.mrb[3].mxu1  ;;  %v322_v21 = vld [vmem:[#allocation2 + $0x30] sm:$0xff] }
 0x16b   : > { %v323_v32 = vld [vmem:[#allocation2 + $0x38] sm:$0xff] }
 0x16c   : > { %1653 = vmatmul.mubr.bf16.gmra.mrb[108].mxu0 %v3314_v20  ;;  %2047 = vst.msk [vmem:[#allocation2] sm:$0xff] %vm251_vm0, %v1982_v30  ;;  %v1983_v33 = vadd.f32 %v1731_v31, %v317_v26  ;;  %1942 = vmatmul.mubr.bf16.gmra.mrb[108].mxu1 %v3315_v24  ;;  %v3332_v24 = vld [vmem:[%s3620_s11 + $0x3c0] ss:$16 sps:$4 sm:$0xff]   ;;  %v3334_v31 = vld [vmem:[%s3620_s11 + $0x3e4] ss:$16 sps:$4 sm:$0xff]  }
 0x16d   : > { %1660 = vmatprep.mubr.bf16.mxu0 %v3316_v25  ;;  %1949 = vmatprep.mubr.bf16.mxu1 %v3318_v29  ;;  %v3333_v25 = vld [vmem:[%s3620_s11 + $0x3c8] ss:$16 sps:$4 sm:$0xff]  }
 0x16e   : > { %2048 = vst.msk [vmem:[#allocation2 + $0x8] sm:$0xff] %vm251_vm0, %v1983_v33 }
 0x16f   : > { %v1446_v34 = vpop.f32.mrb[4].mxu0  ;;  %v1735_v36 = vpop.f32.mrb[4].mxu1 }
 0x170   : > { %v1448_v37 = vpop.f32.mrb[5].mxu0  ;;  %v1736_v41 = vadd.f32 %v1735_v36, %v1446_v34  ;;  %v1737_v42 = vpop.f32.mrb[5].mxu1 }
 0x171   : > { %v1449_v43 = vpop.f32.mrb[6].mxu0  ;;  %v1738_v46 = vpop.f32.mrb[6].mxu1 }
 0x172   : > { %v1451_v47 = vpop.f32.mrb[7].mxu0  ;;  %v1984_v49 = vadd.f32 %v1736_v41, %v318_v35  ;;  %v1739_v50 = vadd.f32 %v1738_v46, %v1449_v43  ;;  %v1740_v51 = vpop.f32.mrb[7].mxu1  ;;  %v3336_v35 = vld [vmem:[%s3620_s11 + $0x3ec] ss:$16 sps:$4 sm:$0xff]  }
 0x173   : > { %v2114_v52 = vld [vmem:[#allocation2] sm:$0xff] }
 0x174   : > { %1661 = vmatmul.mubr.bf16.gmra.mrb[112].mxu0 %v3320_v38  ;;  %v2185_v53 = vadd.f32 %v4019_v40, %v2114_v52  ;;  %2049 = vst.msk [vmem:[#allocation2 + $0x10] sm:$0xff] %vm251_vm0, %v1984_v49  ;;  %v1985_v54 = vadd.f32 %v1739_v50, %v319_v45  ;;  %1950 = vmatmul.mubr.bf16.gmra.mrb[112].mxu1 %v3321_v39  ;;  %v3338_v51 = vld [vmem:[%s3620_s11 + $0x3e0] ss:$16 sps:$4 sm:$0xff]  }
 0x175   : > { %1668 = vmatprep.mubr.bf16.mxu0 %v3322_v44  ;;  %v2115_v55 = vld [vmem:[#allocation2 + $0x8] sm:$0xff]  ;;  %1957 = vmatprep.mubr.bf16.mxu1 %v3324_v48  ;;  %v324_v48 = vld [vmem:[#allocation2 + $0x40] sm:$0xff] }
 0x176   : > { %v2249_v56 = vmax.f32 %v2185_v53, 0.0  ;;  %v2186_v57 = vadd.f32 %v4019_v40, %v2115_v55  ;;  %2050 = vst.msk [vmem:[#allocation2 + $0x18] sm:$0xff] %vm251_vm0, %v1985_v54 }
 0x177   : > { %v1454_v58 = vpop.f32.mrb[8].mxu0  ;;  %v1743_v60 = vpop.f32.mrb[8].mxu1 }
 0x178   : > { %v1456_v61 = vpop.f32.mrb[9].mxu0  ;;  %v2982_v0 = vpack.c.bf16 %v2249_v56, %v2249_v56  ;;  %v2250_v1 = vmax.f32 %v2186_v57, 0.0  ;;  %v1744_v2 = vadd.f32 %v1743_v60, %v1454_v58  ;;  %v1745_v3 = vpop.f32.mrb[9].mxu1  ;;  %v3339_v57 = vld [vmem:[%s3620_s11 + $0x3e8] ss:$16 sps:$4 sm:$0xff]  }
 0x179   : > { %v1457_v4 = vpop.f32.mrb[10].mxu0  ;;  %v1746_v7 = vpop.f32.mrb[10].mxu1  ;;  %v325_v58 = vld [vmem:[#allocation2 + $0x48] sm:$0xff] }
 0x17a   : > { %v1459_v8 = vpop.f32.mrb[11].mxu0  ;;  %2570 = vst.msk [vmem:[%s4031_s25] sm:$0xf] %vm2569_vm1, %v2982_v0  ;;  %v2983_v10 = vpack.c.bf16 %v2250_v1, %v2250_v1  ;;  %v1986_v11 = vadd.f32 %v1744_v2, %v320_v59  ;;  %v1747_v12 = vadd.f32 %v1746_v7, %v1457_v4  ;;  %v1748_v13 = vpop.f32.mrb[11].mxu1 }
 0x17b   : > { %v2116_v14 = vld [vmem:[#allocation2 + $0x10] sm:$0xff] }
 0x17c   : > { %1669 = vmatmul.mubr.bf16.gmra.mrb[116].mxu0 %v3326_v62  ;;  %2571 = vst.msk [vmem:[%s4031_s25 + $0x4] sm:$0xf] %vm2569_vm1, %v2983_v10  ;;  %v2187_v15 = vadd.f32 %v4019_v40, %v2116_v14  ;;  %v1987_v16 = vadd.f32 %v1747_v12, %v321_v6  ;;  %1958 = vmatmul.mubr.bf16.gmra.mrb[116].mxu1 %v3327_v63  ;;  %v326_v8 = vld [vmem:[#allocation2 + $0x50] sm:$0xff] }
 0x17d   : > { %2051 = vst.msk [vmem:[#allocation2 + $0x20] sm:$0xff] %vm251_vm0, %v1986_v11  ;;  %1676 = vmatprep.mubr.bf16.mxu0 %v3328_v5  ;;  %v2117_v17 = vld [vmem:[#allocation2 + $0x18] sm:$0xff]  ;;  %1965 = vmatprep.mubr.bf16.mxu1 %v3330_v9 }
 0x17e   : > { %v2251_v18 = vmax.f32 %v2187_v15, 0.0  ;;  %v2188_v19 = vadd.f32 %v4019_v40, %v2117_v17  ;;  %2052 = vst.msk [vmem:[#allocation2 + $0x28] sm:$0xff] %vm251_vm0, %v1987_v16  ;;  %v327_v16 = vld [vmem:[#allocation2 + $0x58] sm:$0xff] }
 0x17f   : > { %v1462_v20 = vpop.f32.mrb[12].mxu0  ;;  %v1751_v22 = vpop.f32.mrb[12].mxu1 }
 0x180   : > { %v1464_v23 = vpop.f32.mrb[13].mxu0  ;;  %v2984_v26 = vpack.c.bf16 %v2251_v18, %v2251_v18  ;;  %v2252_v27 = vmax.f32 %v2188_v19, 0.0  ;;  %v1752_v28 = vadd.f32 %v1751_v22, %v1462_v20  ;;  %v1753_v29 = vpop.f32.mrb[13].mxu1 }
 0x181   : > { %v1465_v30 = vpop.f32.mrb[14].mxu0  ;;  %v1754_v33 = vpop.f32.mrb[14].mxu1 }
 0x182   : > { %v1467_v34 = vpop.f32.mrb[15].mxu0  ;;  %2572 = vst.msk [vmem:[%s4031_s25 + $0x8] sm:$0xf] %vm2569_vm1, %v2984_v26  ;;  %v2985_v36 = vpack.c.bf16 %v2252_v27, %v2252_v27  ;;  %v1988_v37 = vadd.f32 %v1752_v28, %v322_v21  ;;  %v1755_v38 = vadd.f32 %v1754_v33, %v1465_v30  ;;  %v1756_v39 = vpop.f32.mrb[15].mxu1  ;;  %v328_v30 = vld [vmem:[#allocation2 + $0x60] sm:$0xff] }
 0x184   : > { %v2118_v41 = vld [vmem:[#allocation2 + $0x20] sm:$0xff]  ;;  %1677 = vmatmul.mubr.bf16.gmra.mrb[120].mxu0 %v3332_v24  ;;  %2573 = vst.msk [vmem:[%s4031_s25 + $0xc] sm:$0xf] %vm2569_vm1, %v2985_v36  ;;  %v1989_v43 = vadd.f32 %v1755_v38, %v323_v32  ;;  %1966 = vmatmul.mubr.bf16.gmra.mrb[120].mxu1 %v3333_v25  ;;  %v329_v38 = vld [vmem:[#allocation2 + $0x68] sm:$0xff] }
 0x185   : > { %v2189_v42 = vadd.f32 %v4019_v40, %v2118_v41  ;;  %2053 = vst.msk [vmem:[#allocation2 + $0x30] sm:$0xff] %vm251_vm0, %v1988_v37  ;;  %1684 = vmatprep.mubr.bf16.mxu0 %v3334_v31  ;;  %v2119_v44 = vld [vmem:[#allocation2 + $0x28] sm:$0xff]  ;;  %1973 = vmatprep.mubr.bf16.mxu1 %v3336_v35 }
 0x186   : > { %v2190_v46 = vadd.f32 %v4019_v40, %v2119_v44  ;;  %2054 = vst.msk [vmem:[#allocation2 + $0x38] sm:$0xff] %vm251_vm0, %v1989_v43 }
 0x187   : > { %v2253_v45 = vmax.f32 %v2189_v42, 0.0  ;;  %v1470_v47 = vpop.f32.mrb[16].mxu0  ;;  %v1759_v49 = vpop.f32.mrb[16].mxu1 }
 0x188   : > { %v1472_v50 = vpop.f32.mrb[17].mxu0  ;;  %v2254_v53 = vmax.f32 %v2190_v46, 0.0  ;;  %v1760_v54 = vadd.f32 %v1759_v49, %v1470_v47  ;;  %v1761_v55 = vpop.f32.mrb[17].mxu1 }
 0x189   : > { %v2986_v52 = vpack.c.bf16 %v2253_v45, %v2253_v45  ;;  %v1473_v56 = vpop.f32.mrb[18].mxu0  ;;  %v1762_v59 = vpop.f32.mrb[18].mxu1 }
 0x18a   : > { %v1475_v60 = vpop.f32.mrb[19].mxu0  ;;  %v2987_v61 = vpack.c.bf16 %v2254_v53, %v2254_v53  ;;  %v1990_v62 = vadd.f32 %v1760_v54, %v324_v48  ;;  %v1763_v63 = vadd.f32 %v1762_v59, %v1473_v56  ;;  %v1764_v0 = vpop.f32.mrb[19].mxu1  ;;  %v330_v53 = vld [vmem:[#allocation2 + $0x70] sm:$0xff] }
 0x18b   : > { %2574 = vst.msk [vmem:[%s4031_s25 + $0x10] sm:$0xf] %vm2569_vm1, %v2986_v52 }
 0x18c   : > { %v2120_v1 = vld [vmem:[#allocation2 + $0x30] sm:$0xff]  ;;  %1685 = vmatmul.mubr.bf16.gmra.mrb[124].mxu0 %v3338_v51  ;;  %2575 = vst.msk [vmem:[%s4031_s25 + $0x14] sm:$0xf] %vm2569_vm1, %v2987_v61  ;;  %v1991_v3 = vadd.f32 %v1763_v63, %v325_v58  ;;  %1974 = vmatmul.mubr.bf16.gmra.mrb[124].mxu1 %v3339_v57  ;;  %v331_v61 = vld [vmem:[#allocation2 + $0x78] sm:$0xff] }
 0x18d   : > { %v2191_v2 = vadd.f32 %v4019_v40, %v2120_v1  ;;  %2055 = vst.msk [vmem:[#allocation2 + $0x40] sm:$0xff] %vm251_vm0, %v1990_v62  ;;  %v2121_v4 = vld [vmem:[#allocation2 + $0x38] sm:$0xff] }
 0x18e   : > { %v2192_v6 = vadd.f32 %v4019_v40, %v2121_v4  ;;  %2056 = vst.msk [vmem:[#allocation2 + $0x48] sm:$0xff] %vm251_vm0, %v1991_v3 }
 0x18f   : > { %v2255_v5 = vmax.f32 %v2191_v2, 0.0  ;;  %v1478_v7 = vpop.f32.mrb[20].mxu0  ;;  %v1767_v9 = vpop.f32.mrb[20].mxu1 }
 0x190   : > { %v1480_v10 = vpop.f32.mrb[21].mxu0  ;;  %v2256_v12 = vmax.f32 %v2192_v6, 0.0  ;;  %v1768_v13 = vadd.f32 %v1767_v9, %v1478_v7  ;;  %v1769_v14 = vpop.f32.mrb[21].mxu1 }
 0x191   : > { %v2988_v11 = vpack.c.bf16 %v2255_v5, %v2255_v5  ;;  %v1481_v15 = vpop.f32.mrb[22].mxu0  ;;  %v1770_v17 = vpop.f32.mrb[22].mxu1 }
 0x192   : > { %v1483_v18 = vpop.f32.mrb[23].mxu0  ;;  %v2989_v19 = vpack.c.bf16 %v2256_v12, %v2256_v12  ;;  %v1992_v20 = vadd.f32 %v1768_v13, %v326_v8  ;;  %v1771_v21 = vadd.f32 %v1770_v17, %v1481_v15  ;;  %v1772_v22 = vpop.f32.mrb[23].mxu1 }
 0x193   : > { %2576 = vst.msk [vmem:[%s4031_s25 + $0x18] sm:$0xf] %vm2569_vm1, %v2988_v11  ;;  %v332_v11 = vld [vmem:[#allocation2 + $0x80] sm:$0xff] }
 0x194   : > { %v2122_v23 = vld [vmem:[#allocation2 + $0x40] sm:$0xff]  ;;  %2577 = vst.msk [vmem:[%s4031_s25 + $0x1c] sm:$0xf] %vm2569_vm1, %v2989_v19  ;;  %v1993_v25 = vadd.f32 %v1771_v21, %v327_v16  ;;  %v333_v19 = vld [vmem:[#allocation2 + $0x88] sm:$0xff] }
 0x195   : > { %v2193_v24 = vadd.f32 %v4019_v40, %v2122_v23  ;;  %2057 = vst.msk [vmem:[#allocation2 + $0x50] sm:$0xff] %vm251_vm0, %v1992_v20  ;;  %v2123_v26 = vld [vmem:[#allocation2 + $0x48] sm:$0xff] }
 0x196   : > { %v2194_v28 = vadd.f32 %v4019_v40, %v2123_v26  ;;  %2058 = vst.msk [vmem:[#allocation2 + $0x58] sm:$0xff] %vm251_vm0, %v1993_v25 }
 0x197   : > { %v2257_v27 = vmax.f32 %v2193_v24, 0.0  ;;  %v1486_v29 = vpop.f32.mrb[24].mxu0  ;;  %v1775_v31 = vpop.f32.mrb[24].mxu1 }
 0x198   : > { %v1488_v32 = vpop.f32.mrb[25].mxu0  ;;  %v2258_v34 = vmax.f32 %v2194_v28, 0.0  ;;  %v1776_v35 = vadd.f32 %v1775_v31, %v1486_v29  ;;  %v1777_v36 = vpop.f32.mrb[25].mxu1 }
 0x199   : > { %v2990_v33 = vpack.c.bf16 %v2257_v27, %v2257_v27  ;;  %v1489_v37 = vpop.f32.mrb[26].mxu0  ;;  %v1778_v39 = vpop.f32.mrb[26].mxu1 }
 0x19a   : > { %v1491_v41 = vpop.f32.mrb[27].mxu0  ;;  %v2991_v42 = vpack.c.bf16 %v2258_v34, %v2258_v34  ;;  %v1994_v43 = vadd.f32 %v1776_v35, %v328_v30  ;;  %v1779_v44 = vadd.f32 %v1778_v39, %v1489_v37  ;;  %v1780_v45 = vpop.f32.mrb[27].mxu1 }
 0x19b   : > { %2578 = vst.msk [vmem:[%s4031_s25 + $0x20] sm:$0xf] %vm2569_vm1, %v2990_v33  ;;  %v334_v33 = vld [vmem:[#allocation2 + $0x90] sm:$0xff] }
 0x19c   : > { %v2124_v46 = vld [vmem:[#allocation2 + $0x50] sm:$0xff]  ;;  %2579 = vst.msk [vmem:[%s4031_s25 + $0x24] sm:$0xf] %vm2569_vm1, %v2991_v42  ;;  %v1995_v48 = vadd.f32 %v1779_v44, %v329_v38  ;;  %v335_v42 = vld [vmem:[#allocation2 + $0x98] sm:$0xff] }
 0x19d   : > { %v2195_v47 = vadd.f32 %v4019_v40, %v2124_v46  ;;  %2059 = vst.msk [vmem:[#allocation2 + $0x60] sm:$0xff] %vm251_vm0, %v1994_v43  ;;  %v2125_v49 = vld [vmem:[#allocation2 + $0x58] sm:$0xff] }
 0x19e   : > { %v2196_v51 = vadd.f32 %v4019_v40, %v2125_v49  ;;  %2060 = vst.msk [vmem:[#allocation2 + $0x68] sm:$0xff] %vm251_vm0, %v1995_v48 }
 0x19f   : > { %v2259_v50 = vmax.f32 %v2195_v47, 0.0  ;;  %v1494_v52 = vpop.f32.mrb[28].mxu0  ;;  %v1783_v54 = vpop.f32.mrb[28].mxu1 }
 0x1a0   : > { %v1496_v55 = vpop.f32.mrb[29].mxu0  ;;  %v2260_v57 = vmax.f32 %v2196_v51, 0.0  ;;  %v1784_v58 = vadd.f32 %v1783_v54, %v1494_v52  ;;  %v1785_v59 = vpop.f32.mrb[29].mxu1 }
 0x1a1   : > { %v2992_v56 = vpack.c.bf16 %v2259_v50, %v2259_v50  ;;  %v1497_v60 = vpop.f32.mrb[30].mxu0  ;;  %v1786_v62 = vpop.f32.mrb[30].mxu1 }
 0x1a2   : > { %v1499_v63 = vpop.f32.mrb[31].mxu0  ;;  %v2993_v0 = vpack.c.bf16 %v2260_v57, %v2260_v57  ;;  %v1996_v1 = vadd.f32 %v1784_v58, %v330_v53  ;;  %v1787_v2 = vadd.f32 %v1786_v62, %v1497_v60  ;;  %v1788_v3 = vpop.f32.mrb[31].mxu1 }
 0x1a3   : > { %2580 = vst.msk [vmem:[%s4031_s25 + $0x28] sm:$0xf] %vm2569_vm1, %v2992_v56  ;;  %v336_v56 = vld [vmem:[#allocation2 + $0xa0] sm:$0xff] }
 0x1a4   : > { %v2126_v4 = vld [vmem:[#allocation2 + $0x60] sm:$0xff]  ;;  %2581 = vst.msk [vmem:[%s4031_s25 + $0x2c] sm:$0xf] %vm2569_vm1, %v2993_v0  ;;  %v1997_v6 = vadd.f32 %v1787_v2, %v331_v61  ;;  %v337_v0 = vld [vmem:[#allocation2 + $0xa8] sm:$0xff] }
 0x1a5   : > { %v2197_v5 = vadd.f32 %v4019_v40, %v2126_v4  ;;  %2061 = vst.msk [vmem:[#allocation2 + $0x70] sm:$0xff] %vm251_vm0, %v1996_v1  ;;  %v2127_v7 = vld [vmem:[#allocation2 + $0x68] sm:$0xff] }
 0x1a6   : > { %v2198_v9 = vadd.f32 %v4019_v40, %v2127_v7  ;;  %2062 = vst.msk [vmem:[#allocation2 + $0x78] sm:$0xff] %vm251_vm0, %v1997_v6 }
 0x1a7   : > { %v2261_v8 = vmax.f32 %v2197_v5, 0.0  ;;  %v1502_v10 = vpop.f32.mrb[32].mxu0  ;;  %v1791_v12 = vpop.f32.mrb[32].mxu1 }
 0x1a8   : > { %v1504_v13 = vpop.f32.mrb[33].mxu0  ;;  %v2262_v15 = vmax.f32 %v2198_v9, 0.0  ;;  %v1792_v16 = vadd.f32 %v1791_v12, %v1502_v10  ;;  %v1793_v17 = vpop.f32.mrb[33].mxu1 }
 0x1a9   : > { %v2994_v14 = vpack.c.bf16 %v2261_v8, %v2261_v8  ;;  %v1505_v18 = vpop.f32.mrb[34].mxu0  ;;  %v1794_v20 = vpop.f32.mrb[34].mxu1 }
 0x1aa   : > { %v1507_v21 = vpop.f32.mrb[35].mxu0  ;;  %v2995_v22 = vpack.c.bf16 %v2262_v15, %v2262_v15  ;;  %v1998_v23 = vadd.f32 %v1792_v16, %v332_v11  ;;  %v1795_v24 = vadd.f32 %v1794_v20, %v1505_v18  ;;  %v1796_v25 = vpop.f32.mrb[35].mxu1 }
 0x1ab   : > { %2582 = vst.msk [vmem:[%s4031_s25 + $0x30] sm:$0xf] %vm2569_vm1, %v2994_v14  ;;  %v338_v14 = vld [vmem:[#allocation2 + $0xb0] sm:$0xff] }
 0x1ac   : > { %v2128_v26 = vld [vmem:[#allocation2 + $0x70] sm:$0xff]  ;;  %2583 = vst.msk [vmem:[%s4031_s25 + $0x34] sm:$0xf] %vm2569_vm1, %v2995_v22  ;;  %v1999_v28 = vadd.f32 %v1795_v24, %v333_v19  ;;  %v339_v22 = vld [vmem:[#allocation2 + $0xb8] sm:$0xff] }
 0x1ad   : > { %v2199_v27 = vadd.f32 %v4019_v40, %v2128_v26  ;;  %2063 = vst.msk [vmem:[#allocation2 + $0x80] sm:$0xff] %vm251_vm0, %v1998_v23  ;;  %v2129_v29 = vld [vmem:[#allocation2 + $0x78] sm:$0xff] }
 0x1ae   : > { %v2200_v31 = vadd.f32 %v4019_v40, %v2129_v29  ;;  %2064 = vst.msk [vmem:[#allocation2 + $0x88] sm:$0xff] %vm251_vm0, %v1999_v28 }
 0x1af   : > { %v2263_v30 = vmax.f32 %v2199_v27, 0.0  ;;  %v1510_v32 = vpop.f32.mrb[36].mxu0  ;;  %v1799_v34 = vpop.f32.mrb[36].mxu1 }
 0x1b0   : > { %v1512_v35 = vpop.f32.mrb[37].mxu0  ;;  %v2264_v37 = vmax.f32 %v2200_v31, 0.0  ;;  %v1800_v38 = vadd.f32 %v1799_v34, %v1510_v32  ;;  %v1801_v39 = vpop.f32.mrb[37].mxu1 }
 0x1b1   : > { %v2996_v36 = vpack.c.bf16 %v2263_v30, %v2263_v30  ;;  %v1513_v41 = vpop.f32.mrb[38].mxu0  ;;  %v1802_v43 = vpop.f32.mrb[38].mxu1 }
 0x1b2   : > { %v1515_v44 = vpop.f32.mrb[39].mxu0  ;;  %v2997_v45 = vpack.c.bf16 %v2264_v37, %v2264_v37  ;;  %v2000_v46 = vadd.f32 %v1800_v38, %v334_v33  ;;  %v1803_v47 = vadd.f32 %v1802_v43, %v1513_v41  ;;  %v1804_v48 = vpop.f32.mrb[39].mxu1 }
 0x1b3   : > { %2584 = vst.msk [vmem:[%s4031_s25 + $0x38] sm:$0xf] %vm2569_vm1, %v2996_v36  ;;  %v340_v36 = vld [vmem:[#allocation2 + $0xc0] sm:$0xff] }
 0x1b4   : > { %v2130_v49 = vld [vmem:[#allocation2 + $0x80] sm:$0xff]  ;;  %2585 = vst.msk [vmem:[%s4031_s25 + $0x3c] sm:$0xf] %vm2569_vm1, %v2997_v45  ;;  %v2001_v51 = vadd.f32 %v1803_v47, %v335_v42  ;;  %v341_v45 = vld [vmem:[#allocation2 + $0xc8] sm:$0xff] }
 0x1b5   : > { %v2201_v50 = vadd.f32 %v4019_v40, %v2130_v49  ;;  %2065 = vst.msk [vmem:[#allocation2 + $0x90] sm:$0xff] %vm251_vm0, %v2000_v46  ;;  %v2131_v52 = vld [vmem:[#allocation2 + $0x88] sm:$0xff] }
 0x1b6   : > { %v2202_v54 = vadd.f32 %v4019_v40, %v2131_v52  ;;  %2066 = vst.msk [vmem:[#allocation2 + $0x98] sm:$0xff] %vm251_vm0, %v2001_v51 }
 0x1b7   : > { %v2265_v53 = vmax.f32 %v2201_v50, 0.0  ;;  %v1518_v55 = vpop.f32.mrb[40].mxu0  ;;  %v1807_v57 = vpop.f32.mrb[40].mxu1 }
 0x1b8   : > { %v1520_v58 = vpop.f32.mrb[41].mxu0  ;;  %v2266_v60 = vmax.f32 %v2202_v54, 0.0  ;;  %v1808_v61 = vadd.f32 %v1807_v57, %v1518_v55  ;;  %v1809_v62 = vpop.f32.mrb[41].mxu1 }
 0x1b9   : > { %v2998_v59 = vpack.c.bf16 %v2265_v53, %v2265_v53  ;;  %v1521_v63 = vpop.f32.mrb[42].mxu0  ;;  %v1810_v1 = vpop.f32.mrb[42].mxu1 }
 0x1ba   : > { %v1523_v2 = vpop.f32.mrb[43].mxu0  ;;  %v2999_v3 = vpack.c.bf16 %v2266_v60, %v2266_v60  ;;  %v2002_v4 = vadd.f32 %v1808_v61, %v336_v56  ;;  %v1811_v5 = vadd.f32 %v1810_v1, %v1521_v63  ;;  %v1812_v6 = vpop.f32.mrb[43].mxu1 }
 0x1bb   : > { %2586 = vst.msk [vmem:[%s4031_s25 + $0x40] sm:$0xf] %vm2569_vm1, %v2998_v59  ;;  %v342_v59 = vld [vmem:[#allocation2 + $0xd0] sm:$0xff] }
 0x1bc   : > { %v2132_v7 = vld [vmem:[#allocation2 + $0x90] sm:$0xff]  ;;  %2587 = vst.msk [vmem:[%s4031_s25 + $0x44] sm:$0xf] %vm2569_vm1, %v2999_v3  ;;  %v2003_v9 = vadd.f32 %v1811_v5, %v337_v0  ;;  %v343_v3 = vld [vmem:[#allocation2 + $0xd8] sm:$0xff] }
 0x1bd   : > { %v2203_v8 = vadd.f32 %v4019_v40, %v2132_v7  ;;  %2067 = vst.msk [vmem:[#allocation2 + $0xa0] sm:$0xff] %vm251_vm0, %v2002_v4  ;;  %v2133_v10 = vld [vmem:[#allocation2 + $0x98] sm:$0xff] }
 0x1be   : > { %v2204_v12 = vadd.f32 %v4019_v40, %v2133_v10  ;;  %2068 = vst.msk [vmem:[#allocation2 + $0xa8] sm:$0xff] %vm251_vm0, %v2003_v9 }
 0x1bf   : > { %v2267_v11 = vmax.f32 %v2203_v8, 0.0  ;;  %v1526_v13 = vpop.f32.mrb[44].mxu0  ;;  %v1815_v15 = vpop.f32.mrb[44].mxu1 }
 0x1c0   : > { %v1528_v16 = vpop.f32.mrb[45].mxu0  ;;  %v2268_v18 = vmax.f32 %v2204_v12, 0.0  ;;  %v1816_v19 = vadd.f32 %v1815_v15, %v1526_v13  ;;  %v1817_v20 = vpop.f32.mrb[45].mxu1 }
 0x1c1   : > { %v3000_v17 = vpack.c.bf16 %v2267_v11, %v2267_v11  ;;  %v1529_v21 = vpop.f32.mrb[46].mxu0  ;;  %v1818_v23 = vpop.f32.mrb[46].mxu1 }
 0x1c2   : > { %v1531_v24 = vpop.f32.mrb[47].mxu0  ;;  %v3001_v25 = vpack.c.bf16 %v2268_v18, %v2268_v18  ;;  %v2004_v26 = vadd.f32 %v1816_v19, %v338_v14  ;;  %v1819_v27 = vadd.f32 %v1818_v23, %v1529_v21  ;;  %v1820_v28 = vpop.f32.mrb[47].mxu1 }
 0x1c3   : > { %2588 = vst.msk [vmem:[%s4031_s25 + $0x48] sm:$0xf] %vm2569_vm1, %v3000_v17  ;;  %v344_v17 = vld [vmem:[#allocation2 + $0xe0] sm:$0xff] }
 0x1c4   : > { %v2134_v29 = vld [vmem:[#allocation2 + $0xa0] sm:$0xff]  ;;  %2589 = vst.msk [vmem:[%s4031_s25 + $0x4c] sm:$0xf] %vm2569_vm1, %v3001_v25  ;;  %v2005_v31 = vadd.f32 %v1819_v27, %v339_v22  ;;  %v345_v25 = vld [vmem:[#allocation2 + $0xe8] sm:$0xff] }
 0x1c5   : > { %v2205_v30 = vadd.f32 %v4019_v40, %v2134_v29  ;;  %2069 = vst.msk [vmem:[#allocation2 + $0xb0] sm:$0xff] %vm251_vm0, %v2004_v26  ;;  %v2135_v32 = vld [vmem:[#allocation2 + $0xa8] sm:$0xff] }
 0x1c6   : > { %v2206_v34 = vadd.f32 %v4019_v40, %v2135_v32  ;;  %2070 = vst.msk [vmem:[#allocation2 + $0xb8] sm:$0xff] %vm251_vm0, %v2005_v31 }
 0x1c7   : > { %v2269_v33 = vmax.f32 %v2205_v30, 0.0  ;;  %v1534_v35 = vpop.f32.mrb[48].mxu0  ;;  %v1823_v37 = vpop.f32.mrb[48].mxu1 }
 0x1c8   : > { %v1536_v38 = vpop.f32.mrb[49].mxu0  ;;  %v2270_v41 = vmax.f32 %v2206_v34, 0.0  ;;  %v1824_v42 = vadd.f32 %v1823_v37, %v1534_v35  ;;  %v1825_v43 = vpop.f32.mrb[49].mxu1 }
 0x1c9   : > { %v3002_v39 = vpack.c.bf16 %v2269_v33, %v2269_v33  ;;  %v1537_v44 = vpop.f32.mrb[50].mxu0  ;;  %v1826_v46 = vpop.f32.mrb[50].mxu1 }
 0x1ca   : > { %v1539_v47 = vpop.f32.mrb[51].mxu0  ;;  %v3003_v48 = vpack.c.bf16 %v2270_v41, %v2270_v41  ;;  %v2006_v49 = vadd.f32 %v1824_v42, %v340_v36  ;;  %v1827_v50 = vadd.f32 %v1826_v46, %v1537_v44  ;;  %v1828_v51 = vpop.f32.mrb[51].mxu1 }
 0x1cb   : > { %2590 = vst.msk [vmem:[%s4031_s25 + $0x50] sm:$0xf] %vm2569_vm1, %v3002_v39  ;;  %v346_v39 = vld [vmem:[#allocation2 + $0xf0] sm:$0xff] }
 0x1cc   : > { %v2136_v52 = vld [vmem:[#allocation2 + $0xb0] sm:$0xff]  ;;  %2591 = vst.msk [vmem:[%s4031_s25 + $0x54] sm:$0xf] %vm2569_vm1, %v3003_v48  ;;  %v2007_v54 = vadd.f32 %v1827_v50, %v341_v45  ;;  %v347_v48 = vld [vmem:[#allocation2 + $0xf8] sm:$0xff] }
 0x1cd   : > { %v2207_v53 = vadd.f32 %v4019_v40, %v2136_v52  ;;  %2071 = vst.msk [vmem:[#allocation2 + $0xc0] sm:$0xff] %vm251_vm0, %v2006_v49  ;;  %v2137_v55 = vld [vmem:[#allocation2 + $0xb8] sm:$0xff] }
 0x1ce   : > { %v2208_v57 = vadd.f32 %v4019_v40, %v2137_v55  ;;  %2072 = vst.msk [vmem:[#allocation2 + $0xc8] sm:$0xff] %vm251_vm0, %v2007_v54 }
 0x1cf   : > { %v2271_v56 = vmax.f32 %v2207_v53, 0.0  ;;  %v1542_v58 = vpop.f32.mrb[52].mxu0  ;;  %v1831_v60 = vpop.f32.mrb[52].mxu1 }
 0x1d0   : > { %v1544_v61 = vpop.f32.mrb[53].mxu0  ;;  %v2272_v63 = vmax.f32 %v2208_v57, 0.0  ;;  %v1832_v0 = vadd.f32 %v1831_v60, %v1542_v58  ;;  %v1833_v1 = vpop.f32.mrb[53].mxu1 }
 0x1d1   : > { %v3004_v62 = vpack.c.bf16 %v2271_v56, %v2271_v56  ;;  %v1545_v2 = vpop.f32.mrb[54].mxu0  ;;  %v1834_v4 = vpop.f32.mrb[54].mxu1 }
 0x1d2   : > { %v1547_v5 = vpop.f32.mrb[55].mxu0  ;;  %v3005_v6 = vpack.c.bf16 %v2272_v63, %v2272_v63  ;;  %v2008_v7 = vadd.f32 %v1832_v0, %v342_v59  ;;  %v1835_v8 = vadd.f32 %v1834_v4, %v1545_v2  ;;  %v1836_v9 = vpop.f32.mrb[55].mxu1 }
 0x1d3   : > { %2592 = vst.msk [vmem:[%s4031_s25 + $0x58] sm:$0xf] %vm2569_vm1, %v3004_v62  ;;  %v348_v62 = vld [vmem:[#allocation2 + $0x100] sm:$0xff] }
 0x1d4   : > { %v2138_v10 = vld [vmem:[#allocation2 + $0xc0] sm:$0xff]  ;;  %2593 = vst.msk [vmem:[%s4031_s25 + $0x5c] sm:$0xf] %vm2569_vm1, %v3005_v6  ;;  %v2009_v12 = vadd.f32 %v1835_v8, %v343_v3  ;;  %v349_v6 = vld [vmem:[#allocation2 + $0x108] sm:$0xff] }
 0x1d5   : > { %v2209_v11 = vadd.f32 %v4019_v40, %v2138_v10  ;;  %2073 = vst.msk [vmem:[#allocation2 + $0xd0] sm:$0xff] %vm251_vm0, %v2008_v7  ;;  %v2139_v13 = vld [vmem:[#allocation2 + $0xc8] sm:$0xff] }
 0x1d6   : > { %v2210_v15 = vadd.f32 %v4019_v40, %v2139_v13  ;;  %2074 = vst.msk [vmem:[#allocation2 + $0xd8] sm:$0xff] %vm251_vm0, %v2009_v12 }
 0x1d7   : > { %v2273_v14 = vmax.f32 %v2209_v11, 0.0  ;;  %v1550_v16 = vpop.f32.mrb[56].mxu0  ;;  %v1839_v18 = vpop.f32.mrb[56].mxu1 }
 0x1d8   : > { %v1552_v19 = vpop.f32.mrb[57].mxu0  ;;  %v2274_v21 = vmax.f32 %v2210_v15, 0.0  ;;  %v1840_v22 = vadd.f32 %v1839_v18, %v1550_v16  ;;  %v1841_v23 = vpop.f32.mrb[57].mxu1 }
 0x1d9   : > { %v3006_v20 = vpack.c.bf16 %v2273_v14, %v2273_v14  ;;  %v1553_v24 = vpop.f32.mrb[58].mxu0  ;;  %v1842_v26 = vpop.f32.mrb[58].mxu1 }
 0x1da   : > { %v1555_v27 = vpop.f32.mrb[59].mxu0  ;;  %v3007_v28 = vpack.c.bf16 %v2274_v21, %v2274_v21  ;;  %v2010_v29 = vadd.f32 %v1840_v22, %v344_v17  ;;  %v1843_v30 = vadd.f32 %v1842_v26, %v1553_v24  ;;  %v1844_v31 = vpop.f32.mrb[59].mxu1 }
 0x1db   : > { %2594 = vst.msk [vmem:[%s4031_s25 + $0x60] sm:$0xf] %vm2569_vm1, %v3006_v20  ;;  %v350_v20 = vld [vmem:[#allocation2 + $0x110] sm:$0xff] }
 0x1dc   : > { %v2140_v32 = vld [vmem:[#allocation2 + $0xd0] sm:$0xff]  ;;  %2595 = vst.msk [vmem:[%s4031_s25 + $0x64] sm:$0xf] %vm2569_vm1, %v3007_v28  ;;  %v2011_v34 = vadd.f32 %v1843_v30, %v345_v25  ;;  %v351_v28 = vld [vmem:[#allocation2 + $0x118] sm:$0xff] }
 0x1dd   : > { %v2211_v33 = vadd.f32 %v4019_v40, %v2140_v32  ;;  %2075 = vst.msk [vmem:[#allocation2 + $0xe0] sm:$0xff] %vm251_vm0, %v2010_v29  ;;  %v2141_v35 = vld [vmem:[#allocation2 + $0xd8] sm:$0xff] }
 0x1de   : > { %v2212_v37 = vadd.f32 %v4019_v40, %v2141_v35  ;;  %2076 = vst.msk [vmem:[#allocation2 + $0xe8] sm:$0xff] %vm251_vm0, %v2011_v34 }
 0x1df   : > { %v2275_v36 = vmax.f32 %v2211_v33, 0.0  ;;  %v1558_v38 = vpop.f32.mrb[60].mxu0  ;;  %v1847_v41 = vpop.f32.mrb[60].mxu1 }
 0x1e0   : > { %v1560_v42 = vpop.f32.mrb[61].mxu0  ;;  %v2276_v44 = vmax.f32 %v2212_v37, 0.0  ;;  %v1848_v45 = vadd.f32 %v1847_v41, %v1558_v38  ;;  %v1849_v46 = vpop.f32.mrb[61].mxu1 }
 0x1e1   : > { %v3008_v43 = vpack.c.bf16 %v2275_v36, %v2275_v36  ;;  %v1561_v47 = vpop.f32.mrb[62].mxu0  ;;  %v1850_v49 = vpop.f32.mrb[62].mxu1 }
 0x1e2   : > { %v1563_v50 = vpop.f32.mrb[63].mxu0  ;;  %v3009_v51 = vpack.c.bf16 %v2276_v44, %v2276_v44  ;;  %v2012_v52 = vadd.f32 %v1848_v45, %v346_v39  ;;  %v1851_v53 = vadd.f32 %v1850_v49, %v1561_v47  ;;  %v1852_v54 = vpop.f32.mrb[63].mxu1 }
 0x1e3   : > { %2596 = vst.msk [vmem:[%s4031_s25 + $0x68] sm:$0xf] %vm2569_vm1, %v3008_v43  ;;  %v352_v43 = vld [vmem:[#allocation2 + $0x120] sm:$0xff] }
 0x1e4   : > { %v2142_v55 = vld [vmem:[#allocation2 + $0xe0] sm:$0xff]  ;;  %2597 = vst.msk [vmem:[%s4031_s25 + $0x6c] sm:$0xf] %vm2569_vm1, %v3009_v51  ;;  %v2013_v57 = vadd.f32 %v1851_v53, %v347_v48  ;;  %v353_v51 = vld [vmem:[#allocation2 + $0x128] sm:$0xff] }
 0x1e5   : > { %v2213_v56 = vadd.f32 %v4019_v40, %v2142_v55  ;;  %2077 = vst.msk [vmem:[#allocation2 + $0xf0] sm:$0xff] %vm251_vm0, %v2012_v52  ;;  %v2143_v58 = vld [vmem:[#allocation2 + $0xe8] sm:$0xff] }
 0x1e6   : > { %v2214_v60 = vadd.f32 %v4019_v40, %v2143_v58  ;;  %2078 = vst.msk [vmem:[#allocation2 + $0xf8] sm:$0xff] %vm251_vm0, %v2013_v57 }
 0x1e7   : > { %v2277_v59 = vmax.f32 %v2213_v56, 0.0  ;;  %v1566_v61 = vpop.f32.mrb[64].mxu0  ;;  %v1855_v63 = vpop.f32.mrb[64].mxu1 }
 0x1e8   : > { %v1568_v0 = vpop.f32.mrb[65].mxu0  ;;  %v2278_v2 = vmax.f32 %v2214_v60, 0.0  ;;  %v1856_v3 = vadd.f32 %v1855_v63, %v1566_v61  ;;  %v1857_v4 = vpop.f32.mrb[65].mxu1 }
 0x1e9   : > { %v3010_v1 = vpack.c.bf16 %v2277_v59, %v2277_v59  ;;  %v1569_v5 = vpop.f32.mrb[66].mxu0  ;;  %v1858_v7 = vpop.f32.mrb[66].mxu1 }
 0x1ea   : > { %v1571_v8 = vpop.f32.mrb[67].mxu0  ;;  %v3011_v9 = vpack.c.bf16 %v2278_v2, %v2278_v2  ;;  %v2014_v10 = vadd.f32 %v1856_v3, %v348_v62  ;;  %v1859_v11 = vadd.f32 %v1858_v7, %v1569_v5  ;;  %v1860_v12 = vpop.f32.mrb[67].mxu1 }
 0x1eb   : > { %2598 = vst.msk [vmem:[%s4031_s25 + $0x70] sm:$0xf] %vm2569_vm1, %v3010_v1  ;;  %v354_v1 = vld [vmem:[#allocation2 + $0x130] sm:$0xff] }
 0x1ec   : > { %v2144_v13 = vld [vmem:[#allocation2 + $0xf0] sm:$0xff]  ;;  %2599 = vst.msk [vmem:[%s4031_s25 + $0x74] sm:$0xf] %vm2569_vm1, %v3011_v9  ;;  %v2015_v15 = vadd.f32 %v1859_v11, %v349_v6  ;;  %v355_v9 = vld [vmem:[#allocation2 + $0x138] sm:$0xff] }
 0x1ed   : > { %v2215_v14 = vadd.f32 %v4019_v40, %v2144_v13  ;;  %2079 = vst.msk [vmem:[#allocation2 + $0x100] sm:$0xff] %vm251_vm0, %v2014_v10  ;;  %v2145_v16 = vld [vmem:[#allocation2 + $0xf8] sm:$0xff] }
 0x1ee   : > { %v2216_v18 = vadd.f32 %v4019_v40, %v2145_v16  ;;  %2080 = vst.msk [vmem:[#allocation2 + $0x108] sm:$0xff] %vm251_vm0, %v2015_v15 }
 0x1ef   : > { %v2279_v17 = vmax.f32 %v2215_v14, 0.0  ;;  %v1574_v19 = vpop.f32.mrb[68].mxu0  ;;  %v1863_v21 = vpop.f32.mrb[68].mxu1 }
 0x1f0   : > { %v1576_v22 = vpop.f32.mrb[69].mxu0  ;;  %v2280_v24 = vmax.f32 %v2216_v18, 0.0  ;;  %v1864_v25 = vadd.f32 %v1863_v21, %v1574_v19  ;;  %v1865_v26 = vpop.f32.mrb[69].mxu1  ;;  %v4185_v21 = vld [vmem:[#allocation5] ss:$0 sm:$0xff] }
 0x1f1   : > { %v3012_v23 = vpack.c.bf16 %v2279_v17, %v2279_v17  ;;  %v1577_v27 = vpop.f32.mrb[70].mxu0  ;;  %v1866_v29 = vpop.f32.mrb[70].mxu1 }
 0x1f2   : > { %v1579_v30 = vpop.f32.mrb[71].mxu0  ;;  %v3013_v31 = vpack.c.bf16 %v2280_v24, %v2280_v24  ;;  %v2016_v32 = vadd.f32 %v1864_v25, %v350_v20  ;;  %v1867_v33 = vadd.f32 %v1866_v29, %v1577_v27  ;;  %v1868_v34 = vpop.f32.mrb[71].mxu1  ;;  %v356_v24 = vld [vmem:[#allocation2 + $0x140] sm:$0xff] }
 0x1f3   : > { %2600 = vst.msk [vmem:[%s4031_s25 + $0x78] sm:$0xf] %vm2569_vm1, %v3012_v23 }
 0x1f4   : > { %v2146_v35 = vld [vmem:[#allocation2 + $0x100] sm:$0xff]  ;;  %2601 = vst.msk [vmem:[%s4031_s25 + $0x7c] sm:$0xf] %vm2569_vm1, %v3013_v31  ;;  %v2017_v37 = vadd.f32 %v1867_v33, %v351_v28  ;;  %v357_v31 = vld [vmem:[#allocation2 + $0x148] sm:$0xff] }
 0x1f5   : > { %v2217_v36 = vadd.f32 %v4019_v40, %v2146_v35  ;;  %2081 = vst.msk [vmem:[#allocation2 + $0x110] sm:$0xff] %vm251_vm0, %v2016_v32  ;;  %v2147_v38 = vld [vmem:[#allocation2 + $0x108] sm:$0xff] }
 0x1f6   : > { %v2218_v41 = vadd.f32 %v4019_v40, %v2147_v38  ;;  %2082 = vst.msk [vmem:[#allocation2 + $0x118] sm:$0xff] %vm251_vm0, %v2017_v37 }
 0x1f7   : > { %v2281_v39 = vmax.f32 %v2217_v36, 0.0  ;;  %v1582_v42 = vpop.f32.mrb[72].mxu0  ;;  %v1871_v44 = vpop.f32.mrb[72].mxu1 }
 0x1f8   : > { %v1584_v45 = vpop.f32.mrb[73].mxu0  ;;  %v2282_v47 = vmax.f32 %v2218_v41, 0.0  ;;  %v1872_v48 = vadd.f32 %v1871_v44, %v1582_v42  ;;  %v1873_v49 = vpop.f32.mrb[73].mxu1 }
 0x1f9   : > { %v3014_v46 = vpack.c.bf16 %v2281_v39, %v2281_v39  ;;  %v1585_v50 = vpop.f32.mrb[74].mxu0  ;;  %v1874_v52 = vpop.f32.mrb[74].mxu1 }
 0x1fa   : > { %v1587_v53 = vpop.f32.mrb[75].mxu0  ;;  %v3015_v54 = vpack.c.bf16 %v2282_v47, %v2282_v47  ;;  %v2018_v55 = vadd.f32 %v1872_v48, %v352_v43  ;;  %v1875_v56 = vadd.f32 %v1874_v52, %v1585_v50  ;;  %v1876_v57 = vpop.f32.mrb[75].mxu1 }
 0x1fb   : > { %2602 = vst.msk [vmem:[%s4031_s25 + $0x80] sm:$0xf] %vm2569_vm1, %v3014_v46  ;;  %v358_v46 = vld [vmem:[#allocation2 + $0x150] sm:$0xff] }
 0x1fc   : > { %v2148_v58 = vld [vmem:[#allocation2 + $0x110] sm:$0xff]  ;;  %2603 = vst.msk [vmem:[%s4031_s25 + $0x84] sm:$0xf] %vm2569_vm1, %v3015_v54  ;;  %v2019_v60 = vadd.f32 %v1875_v56, %v353_v51  ;;  %v359_v54 = vld [vmem:[#allocation2 + $0x158] sm:$0xff] }
 0x1fd   : > { %v2219_v59 = vadd.f32 %v4019_v40, %v2148_v58  ;;  %2083 = vst.msk [vmem:[#allocation2 + $0x120] sm:$0xff] %vm251_vm0, %v2018_v55  ;;  %v2149_v61 = vld [vmem:[#allocation2 + $0x118] sm:$0xff] }
 0x1fe   : > { %v2220_v63 = vadd.f32 %v4019_v40, %v2149_v61  ;;  %2084 = vst.msk [vmem:[#allocation2 + $0x128] sm:$0xff] %vm251_vm0, %v2019_v60 }
 0x1ff   : > { %v2283_v62 = vmax.f32 %v2219_v59, 0.0  ;;  %v1590_v0 = vpop.f32.mrb[76].mxu0  ;;  %v1879_v2 = vpop.f32.mrb[76].mxu1 }
 0x200   : > { %v1592_v3 = vpop.f32.mrb[77].mxu0  ;;  %v2284_v5 = vmax.f32 %v2220_v63, 0.0  ;;  %v1880_v6 = vadd.f32 %v1879_v2, %v1590_v0  ;;  %v1881_v7 = vpop.f32.mrb[77].mxu1 }
 0x201   : > { %v3016_v4 = vpack.c.bf16 %v2283_v62, %v2283_v62  ;;  %v1593_v8 = vpop.f32.mrb[78].mxu0  ;;  %v1882_v10 = vpop.f32.mrb[78].mxu1 }
 0x202   : > { %v1595_v11 = vpop.f32.mrb[79].mxu0  ;;  %v3017_v12 = vpack.c.bf16 %v2284_v5, %v2284_v5  ;;  %v2020_v13 = vadd.f32 %v1880_v6, %v354_v1  ;;  %v1883_v14 = vadd.f32 %v1882_v10, %v1593_v8  ;;  %v1884_v15 = vpop.f32.mrb[79].mxu1 }
 0x203   : > { %2604 = vst.msk [vmem:[%s4031_s25 + $0x88] sm:$0xf] %vm2569_vm1, %v3016_v4  ;;  %v360_v4 = vld [vmem:[#allocation2 + $0x160] sm:$0xff] }
 0x204   : > { %v2150_v16 = vld [vmem:[#allocation2 + $0x120] sm:$0xff]  ;;  %2605 = vst.msk [vmem:[%s4031_s25 + $0x8c] sm:$0xf] %vm2569_vm1, %v3017_v12  ;;  %v2021_v18 = vadd.f32 %v1883_v14, %v355_v9  ;;  %v361_v12 = vld [vmem:[#allocation2 + $0x168] sm:$0xff] }
 0x205   : > { %v2221_v17 = vadd.f32 %v4019_v40, %v2150_v16  ;;  %2085 = vst.msk [vmem:[#allocation2 + $0x130] sm:$0xff] %vm251_vm0, %v2020_v13  ;;  %v2151_v19 = vld [vmem:[#allocation2 + $0x128] sm:$0xff] }
 0x206   : > { %v2222_v22 = vadd.f32 %v4185_v21, %v2151_v19  ;;  %2086 = vst.msk [vmem:[#allocation2 + $0x138] sm:$0xff] %vm251_vm0, %v2021_v18 }
 0x207   : > { %v2285_v20 = vmax.f32 %v2221_v17, 0.0  ;;  %v1598_v23 = vpop.f32.mrb[80].mxu0  ;;  %v1887_v25 = vpop.f32.mrb[80].mxu1 }
 0x208   : > { %v1600_v26 = vpop.f32.mrb[81].mxu0  ;;  %v2286_v28 = vmax.f32 %v2222_v22, 0.0  ;;  %v1888_v40 = vadd.f32 %v1887_v25, %v1598_v23  ;;  %v1889_v29 = vpop.f32.mrb[81].mxu1 }
 0x209   : > { %v3018_v27 = vpack.c.bf16 %v2285_v20, %v2285_v20  ;;  %v1601_v30 = vpop.f32.mrb[82].mxu0  ;;  %v1890_v32 = vpop.f32.mrb[82].mxu1 }
 0x20a   : > { %v1603_v33 = vpop.f32.mrb[83].mxu0  ;;  %v3019_v34 = vpack.c.bf16 %v2286_v28, %v2286_v28  ;;  %v2022_v35 = vadd.f32 %v1888_v40, %v356_v24  ;;  %v1891_v36 = vadd.f32 %v1890_v32, %v1601_v30  ;;  %v1892_v37 = vpop.f32.mrb[83].mxu1 }
 0x20b   : > { %2606 = vst.msk [vmem:[%s4031_s25 + $0x90] sm:$0xf] %vm2569_vm1, %v3018_v27  ;;  %v362_v27 = vld [vmem:[#allocation2 + $0x170] sm:$0xff] }
 0x20c   : > { %v2152_v38 = vld [vmem:[#allocation2 + $0x130] sm:$0xff]  ;;  %2607 = vst.msk [vmem:[%s4031_s25 + $0x94] sm:$0xf] %vm2569_vm1, %v3019_v34  ;;  %v2023_v41 = vadd.f32 %v1891_v36, %v357_v31  ;;  %v363_v34 = vld [vmem:[#allocation2 + $0x178] sm:$0xff] }
 0x20d   : > { %v2223_v39 = vadd.f32 %v4185_v21, %v2152_v38  ;;  %2087 = vst.msk [vmem:[#allocation2 + $0x140] sm:$0xff] %vm251_vm0, %v2022_v35  ;;  %v2153_v42 = vld [vmem:[#allocation2 + $0x138] sm:$0xff] }
 0x20e   : > { %v2224_v44 = vadd.f32 %v4185_v21, %v2153_v42  ;;  %2088 = vst.msk [vmem:[#allocation2 + $0x148] sm:$0xff] %vm251_vm0, %v2023_v41 }
 0x20f   : > { %v2287_v43 = vmax.f32 %v2223_v39, 0.0  ;;  %v1606_v45 = vpop.f32.mrb[84].mxu0  ;;  %v1895_v47 = vpop.f32.mrb[84].mxu1 }
 0x210   : > { %v1608_v48 = vpop.f32.mrb[85].mxu0  ;;  %v2288_v50 = vmax.f32 %v2224_v44, 0.0  ;;  %v1896_v51 = vadd.f32 %v1895_v47, %v1606_v45  ;;  %v1897_v52 = vpop.f32.mrb[85].mxu1 }
 0x211   : > { %v3020_v49 = vpack.c.bf16 %v2287_v43, %v2287_v43  ;;  %v1609_v53 = vpop.f32.mrb[86].mxu0  ;;  %v1898_v55 = vpop.f32.mrb[86].mxu1 }
 0x212   : > { %v1611_v56 = vpop.f32.mrb[87].mxu0  ;;  %v3021_v57 = vpack.c.bf16 %v2288_v50, %v2288_v50  ;;  %v2024_v58 = vadd.f32 %v1896_v51, %v358_v46  ;;  %v1899_v59 = vadd.f32 %v1898_v55, %v1609_v53  ;;  %v1900_v60 = vpop.f32.mrb[87].mxu1 }
 0x213   : > { %2608 = vst.msk [vmem:[%s4031_s25 + $0x98] sm:$0xf] %vm2569_vm1, %v3020_v49  ;;  %v364_v49 = vld [vmem:[#allocation2 + $0x180] sm:$0xff] }
 0x214   : > { %v2154_v61 = vld [vmem:[#allocation2 + $0x140] sm:$0xff]  ;;  %2609 = vst.msk [vmem:[%s4031_s25 + $0x9c] sm:$0xf] %vm2569_vm1, %v3021_v57  ;;  %v2025_v63 = vadd.f32 %v1899_v59, %v359_v54  ;;  %v365_v57 = vld [vmem:[#allocation2 + $0x188] sm:$0xff] }
 0x215   : > { %v2225_v62 = vadd.f32 %v4185_v21, %v2154_v61  ;;  %2089 = vst.msk [vmem:[#allocation2 + $0x150] sm:$0xff] %vm251_vm0, %v2024_v58  ;;  %v2155_v0 = vld [vmem:[#allocation2 + $0x148] sm:$0xff] }
 0x216   : > { %v2226_v2 = vadd.f32 %v4185_v21, %v2155_v0  ;;  %2090 = vst.msk [vmem:[#allocation2 + $0x158] sm:$0xff] %vm251_vm0, %v2025_v63 }
 0x217   : > { %v2289_v1 = vmax.f32 %v2225_v62, 0.0  ;;  %v1614_v3 = vpop.f32.mrb[88].mxu0  ;;  %v1903_v5 = vpop.f32.mrb[88].mxu1 }
 0x218   : > { %v1616_v6 = vpop.f32.mrb[89].mxu0  ;;  %v2290_v8 = vmax.f32 %v2226_v2, 0.0  ;;  %v1904_v9 = vadd.f32 %v1903_v5, %v1614_v3  ;;  %v1905_v10 = vpop.f32.mrb[89].mxu1 }
 0x219   : > { %v3022_v7 = vpack.c.bf16 %v2289_v1, %v2289_v1  ;;  %v1617_v11 = vpop.f32.mrb[90].mxu0  ;;  %v1906_v13 = vpop.f32.mrb[90].mxu1 }
 0x21a   : > { %v1619_v14 = vpop.f32.mrb[91].mxu0  ;;  %v3023_v15 = vpack.c.bf16 %v2290_v8, %v2290_v8  ;;  %v2026_v16 = vadd.f32 %v1904_v9, %v360_v4  ;;  %v1907_v17 = vadd.f32 %v1906_v13, %v1617_v11  ;;  %v1908_v18 = vpop.f32.mrb[91].mxu1 }
 0x21b   : > { %2610 = vst.msk [vmem:[%s4031_s25 + $0xa0] sm:$0xf] %vm2569_vm1, %v3022_v7  ;;  %v366_v7 = vld [vmem:[#allocation2 + $0x190] sm:$0xff] }
 0x21c   : > { %v2156_v19 = vld [vmem:[#allocation2 + $0x150] sm:$0xff]  ;;  %2611 = vst.msk [vmem:[%s4031_s25 + $0xa4] sm:$0xf] %vm2569_vm1, %v3023_v15  ;;  %v2027_v22 = vadd.f32 %v1907_v17, %v361_v12  ;;  %v367_v15 = vld [vmem:[#allocation2 + $0x198] sm:$0xff] }
 0x21d   : > { %v2227_v20 = vadd.f32 %v4185_v21, %v2156_v19  ;;  %2091 = vst.msk [vmem:[#allocation2 + $0x160] sm:$0xff] %vm251_vm0, %v2026_v16  ;;  %v2157_v23 = vld [vmem:[#allocation2 + $0x158] sm:$0xff] }
 0x21e   : > { %v2228_v25 = vadd.f32 %v4185_v21, %v2157_v23  ;;  %2092 = vst.msk [vmem:[#allocation2 + $0x168] sm:$0xff] %vm251_vm0, %v2027_v22 }
 0x21f   : > { %v2291_v24 = vmax.f32 %v2227_v20, 0.0  ;;  %v1622_v26 = vpop.f32.mrb[92].mxu0  ;;  %v1911_v28 = vpop.f32.mrb[92].mxu1 }
 0x220   : > { %v1624_v40 = vpop.f32.mrb[93].mxu0  ;;  %v2292_v30 = vmax.f32 %v2228_v25, 0.0  ;;  %v1912_v31 = vadd.f32 %v1911_v28, %v1622_v26  ;;  %v1913_v32 = vpop.f32.mrb[93].mxu1 }
 0x221   : > { %v3024_v29 = vpack.c.bf16 %v2291_v24, %v2291_v24  ;;  %v1625_v33 = vpop.f32.mrb[94].mxu0  ;;  %v1914_v35 = vpop.f32.mrb[94].mxu1 }
 0x222   : > { %v1627_v36 = vpop.f32.mrb[95].mxu0  ;;  %v3025_v37 = vpack.c.bf16 %v2292_v30, %v2292_v30  ;;  %v2028_v38 = vadd.f32 %v1912_v31, %v362_v27  ;;  %v1915_v39 = vadd.f32 %v1914_v35, %v1625_v33  ;;  %v1916_v41 = vpop.f32.mrb[95].mxu1 }
 0x223   : > { %2612 = vst.msk [vmem:[%s4031_s25 + $0xa8] sm:$0xf] %vm2569_vm1, %v3024_v29  ;;  %v368_v29 = vld [vmem:[#allocation2 + $0x1a0] sm:$0xff] }
 0x224   : > { %v2158_v42 = vld [vmem:[#allocation2 + $0x160] sm:$0xff]  ;;  %2613 = vst.msk [vmem:[%s4031_s25 + $0xac] sm:$0xf] %vm2569_vm1, %v3025_v37  ;;  %v2029_v44 = vadd.f32 %v1915_v39, %v363_v34  ;;  %v369_v37 = vld [vmem:[#allocation2 + $0x1a8] sm:$0xff] }
 0x225   : > { %v2229_v43 = vadd.f32 %v4185_v21, %v2158_v42  ;;  %2093 = vst.msk [vmem:[#allocation2 + $0x170] sm:$0xff] %vm251_vm0, %v2028_v38  ;;  %v2159_v45 = vld [vmem:[#allocation2 + $0x168] sm:$0xff] }
 0x226   : > { %v2230_v47 = vadd.f32 %v4185_v21, %v2159_v45  ;;  %2094 = vst.msk [vmem:[#allocation2 + $0x178] sm:$0xff] %vm251_vm0, %v2029_v44 }
 0x227   : > { %v2293_v46 = vmax.f32 %v2229_v43, 0.0  ;;  %v1630_v48 = vpop.f32.mrb[96].mxu0  ;;  %v1919_v50 = vpop.f32.mrb[96].mxu1 }
 0x228   : > { %v1632_v51 = vpop.f32.mrb[97].mxu0  ;;  %v2294_v53 = vmax.f32 %v2230_v47, 0.0  ;;  %v1920_v54 = vadd.f32 %v1919_v50, %v1630_v48  ;;  %v1921_v55 = vpop.f32.mrb[97].mxu1 }
 0x229   : > { %v3026_v52 = vpack.c.bf16 %v2293_v46, %v2293_v46  ;;  %v1633_v56 = vpop.f32.mrb[98].mxu0  ;;  %v1922_v58 = vpop.f32.mrb[98].mxu1 }
 0x22a   : > { %v1635_v59 = vpop.f32.mrb[99].mxu0  ;;  %v3027_v60 = vpack.c.bf16 %v2294_v53, %v2294_v53  ;;  %v2030_v61 = vadd.f32 %v1920_v54, %v364_v49  ;;  %v1923_v62 = vadd.f32 %v1922_v58, %v1633_v56  ;;  %v1924_v63 = vpop.f32.mrb[99].mxu1 }
 0x22b   : > { %2614 = vst.msk [vmem:[%s4031_s25 + $0xb0] sm:$0xf] %vm2569_vm1, %v3026_v52  ;;  %v370_v52 = vld [vmem:[#allocation2 + $0x1b0] sm:$0xff] }
 0x22c   : > { %v2160_v0 = vld [vmem:[#allocation2 + $0x170] sm:$0xff]  ;;  %2615 = vst.msk [vmem:[%s4031_s25 + $0xb4] sm:$0xf] %vm2569_vm1, %v3027_v60  ;;  %v2031_v2 = vadd.f32 %v1923_v62, %v365_v57  ;;  %v371_v60 = vld [vmem:[#allocation2 + $0x1b8] sm:$0xff] }
 0x22d   : > { %v2231_v1 = vadd.f32 %v4185_v21, %v2160_v0  ;;  %2095 = vst.msk [vmem:[#allocation2 + $0x180] sm:$0xff] %vm251_vm0, %v2030_v61  ;;  %v2161_v3 = vld [vmem:[#allocation2 + $0x178] sm:$0xff] }
 0x22e   : > { %v2232_v5 = vadd.f32 %v4185_v21, %v2161_v3  ;;  %2096 = vst.msk [vmem:[#allocation2 + $0x188] sm:$0xff] %vm251_vm0, %v2031_v2 }
 0x22f   : > { %v2295_v4 = vmax.f32 %v2231_v1, 0.0  ;;  %v1638_v6 = vpop.f32.mrb[100].mxu0  ;;  %v1927_v8 = vpop.f32.mrb[100].mxu1 }
 0x230   : > { %v1640_v9 = vpop.f32.mrb[101].mxu0  ;;  %v2296_v11 = vmax.f32 %v2232_v5, 0.0  ;;  %v1928_v12 = vadd.f32 %v1927_v8, %v1638_v6  ;;  %v1929_v13 = vpop.f32.mrb[101].mxu1 }
 0x231   : > { %v3028_v10 = vpack.c.bf16 %v2295_v4, %v2295_v4  ;;  %v1641_v14 = vpop.f32.mrb[102].mxu0  ;;  %v1930_v16 = vpop.f32.mrb[102].mxu1 }
 0x232   : > { %v1643_v17 = vpop.f32.mrb[103].mxu0  ;;  %v3029_v18 = vpack.c.bf16 %v2296_v11, %v2296_v11  ;;  %v2032_v19 = vadd.f32 %v1928_v12, %v366_v7  ;;  %v1931_v20 = vadd.f32 %v1930_v16, %v1641_v14  ;;  %v1932_v22 = vpop.f32.mrb[103].mxu1 }
 0x233   : > { %2616 = vst.msk [vmem:[%s4031_s25 + $0xb8] sm:$0xf] %vm2569_vm1, %v3028_v10  ;;  %v372_v10 = vld [vmem:[#allocation2 + $0x1c0] sm:$0xff] }
 0x234   : > { %v2162_v23 = vld [vmem:[#allocation2 + $0x180] sm:$0xff]  ;;  %2617 = vst.msk [vmem:[%s4031_s25 + $0xbc] sm:$0xf] %vm2569_vm1, %v3029_v18  ;;  %v2033_v25 = vadd.f32 %v1931_v20, %v367_v15  ;;  %v373_v18 = vld [vmem:[#allocation2 + $0x1c8] sm:$0xff] }
 0x235   : > { %v2233_v24 = vadd.f32 %v4185_v21, %v2162_v23  ;;  %2097 = vst.msk [vmem:[#allocation2 + $0x190] sm:$0xff] %vm251_vm0, %v2032_v19  ;;  %v2163_v26 = vld [vmem:[#allocation2 + $0x188] sm:$0xff] }
 0x236   : > { %v2234_v28 = vadd.f32 %v4185_v21, %v2163_v26  ;;  %2098 = vst.msk [vmem:[#allocation2 + $0x198] sm:$0xff] %vm251_vm0, %v2033_v25 }
 0x237   : > { %v2297_v27 = vmax.f32 %v2233_v24, 0.0  ;;  %v1646_v40 = vpop.f32.mrb[104].mxu0  ;;  %v1935_v30 = vpop.f32.mrb[104].mxu1 }
 0x238   : > { %v1648_v31 = vpop.f32.mrb[105].mxu0  ;;  %v2298_v33 = vmax.f32 %v2234_v28, 0.0  ;;  %v1936_v34 = vadd.f32 %v1935_v30, %v1646_v40  ;;  %v1937_v35 = vpop.f32.mrb[105].mxu1 }
 0x239   : > { %v3030_v32 = vpack.c.bf16 %v2297_v27, %v2297_v27  ;;  %v1649_v36 = vpop.f32.mrb[106].mxu0  ;;  %v1938_v38 = vpop.f32.mrb[106].mxu1 }
 0x23a   : > { %v1651_v39 = vpop.f32.mrb[107].mxu0  ;;  %v3031_v41 = vpack.c.bf16 %v2298_v33, %v2298_v33  ;;  %v2034_v42 = vadd.f32 %v1936_v34, %v368_v29  ;;  %v1939_v43 = vadd.f32 %v1938_v38, %v1649_v36  ;;  %v1940_v44 = vpop.f32.mrb[107].mxu1 }
 0x23b   : > { %2618 = vst.msk [vmem:[%s4031_s25 + $0xc0] sm:$0xf] %vm2569_vm1, %v3030_v32  ;;  %v374_v32 = vld [vmem:[#allocation2 + $0x1d0] sm:$0xff] }
 0x23c   : > { %v2164_v45 = vld [vmem:[#allocation2 + $0x190] sm:$0xff]  ;;  %2619 = vst.msk [vmem:[%s4031_s25 + $0xc4] sm:$0xf] %vm2569_vm1, %v3031_v41  ;;  %v2035_v47 = vadd.f32 %v1939_v43, %v369_v37  ;;  %v375_v41 = vld [vmem:[#allocation2 + $0x1d8] sm:$0xff] }
 0x23d   : > { %v2235_v46 = vadd.f32 %v4185_v21, %v2164_v45  ;;  %2099 = vst.msk [vmem:[#allocation2 + $0x1a0] sm:$0xff] %vm251_vm0, %v2034_v42  ;;  %v2165_v48 = vld [vmem:[#allocation2 + $0x198] sm:$0xff] }
 0x23e   : > { %v2236_v50 = vadd.f32 %v4185_v21, %v2165_v48  ;;  %2100 = vst.msk [vmem:[#allocation2 + $0x1a8] sm:$0xff] %vm251_vm0, %v2035_v47 }
 0x23f   : > { %v2299_v49 = vmax.f32 %v2235_v46, 0.0  ;;  %v1654_v51 = vpop.f32.mrb[108].mxu0  ;;  %v1943_v53 = vpop.f32.mrb[108].mxu1 }
 0x240   : > { %v1656_v54 = vpop.f32.mrb[109].mxu0  ;;  %v2300_v56 = vmax.f32 %v2236_v50, 0.0  ;;  %v1944_v57 = vadd.f32 %v1943_v53, %v1654_v51  ;;  %v1945_v58 = vpop.f32.mrb[109].mxu1 }
 0x241   : > { %v3032_v55 = vpack.c.bf16 %v2299_v49, %v2299_v49  ;;  %v1657_v59 = vpop.f32.mrb[110].mxu0  ;;  %v1946_v61 = vpop.f32.mrb[110].mxu1 }
 0x242   : > { %v1659_v62 = vpop.f32.mrb[111].mxu0  ;;  %v3033_v63 = vpack.c.bf16 %v2300_v56, %v2300_v56  ;;  %v2036_v0 = vadd.f32 %v1944_v57, %v370_v52  ;;  %v1947_v1 = vadd.f32 %v1946_v61, %v1657_v59  ;;  %v1948_v2 = vpop.f32.mrb[111].mxu1 }
 0x243   : > { %2620 = vst.msk [vmem:[%s4031_s25 + $0xc8] sm:$0xf] %vm2569_vm1, %v3032_v55  ;;  %v376_v55 = vld [vmem:[#allocation2 + $0x1e0] sm:$0xff] }
 0x244   : > { %v2166_v3 = vld [vmem:[#allocation2 + $0x1a0] sm:$0xff]  ;;  %2621 = vst.msk [vmem:[%s4031_s25 + $0xcc] sm:$0xf] %vm2569_vm1, %v3033_v63  ;;  %v2037_v5 = vadd.f32 %v1947_v1, %v371_v60  ;;  %v377_v63 = vld [vmem:[#allocation2 + $0x1e8] sm:$0xff] }
 0x245   : > { %v2237_v4 = vadd.f32 %v4185_v21, %v2166_v3  ;;  %2101 = vst.msk [vmem:[#allocation2 + $0x1b0] sm:$0xff] %vm251_vm0, %v2036_v0  ;;  %v2167_v6 = vld [vmem:[#allocation2 + $0x1a8] sm:$0xff] }
 0x246   : > { %v2238_v8 = vadd.f32 %v4185_v21, %v2167_v6  ;;  %2102 = vst.msk [vmem:[#allocation2 + $0x1b8] sm:$0xff] %vm251_vm0, %v2037_v5 }
 0x247   : > { %v2301_v7 = vmax.f32 %v2237_v4, 0.0  ;;  %v1662_v9 = vpop.f32.mrb[112].mxu0  ;;  %v1951_v11 = vpop.f32.mrb[112].mxu1 }
 0x248   : > { %v1664_v12 = vpop.f32.mrb[113].mxu0  ;;  %v2302_v14 = vmax.f32 %v2238_v8, 0.0  ;;  %v1952_v15 = vadd.f32 %v1951_v11, %v1662_v9  ;;  %v1953_v16 = vpop.f32.mrb[113].mxu1 }
 0x249   : > { %v3034_v13 = vpack.c.bf16 %v2301_v7, %v2301_v7  ;;  %v1665_v17 = vpop.f32.mrb[114].mxu0  ;;  %v1954_v19 = vpop.f32.mrb[114].mxu1 }
 0x24a   : > { %v1667_v20 = vpop.f32.mrb[115].mxu0  ;;  %v3035_v22 = vpack.c.bf16 %v2302_v14, %v2302_v14  ;;  %v2038_v23 = vadd.f32 %v1952_v15, %v372_v10  ;;  %v1955_v24 = vadd.f32 %v1954_v19, %v1665_v17  ;;  %v1956_v25 = vpop.f32.mrb[115].mxu1 }
 0x24b   : > { %2622 = vst.msk [vmem:[%s4031_s25 + $0xd0] sm:$0xf] %vm2569_vm1, %v3034_v13  ;;  %v378_v13 = vld [vmem:[#allocation2 + $0x1f0] sm:$0xff] }
 0x24c   : > { %v2168_v26 = vld [vmem:[#allocation2 + $0x1b0] sm:$0xff]  ;;  %2623 = vst.msk [vmem:[%s4031_s25 + $0xd4] sm:$0xf] %vm2569_vm1, %v3035_v22  ;;  %v2039_v28 = vadd.f32 %v1955_v24, %v373_v18  ;;  %v379_v22 = vld [vmem:[#allocation2 + $0x1f8] sm:$0xff] }
 0x24d   : > { %v2239_v27 = vadd.f32 %v4185_v21, %v2168_v26  ;;  %2103 = vst.msk [vmem:[#allocation2 + $0x1c0] sm:$0xff] %vm251_vm0, %v2038_v23  ;;  %v2169_v40 = vld [vmem:[#allocation2 + $0x1b8] sm:$0xff] }
 0x24e   : > { %v2240_v30 = vadd.f32 %v4185_v21, %v2169_v40  ;;  %2104 = vst.msk [vmem:[#allocation2 + $0x1c8] sm:$0xff] %vm251_vm0, %v2039_v28 }
 0x24f   : > { %v2303_v29 = vmax.f32 %v2239_v27, 0.0  ;;  %v1670_v31 = vpop.f32.mrb[116].mxu0  ;;  %v1959_v33 = vpop.f32.mrb[116].mxu1 }
 0x250   : > { %v1672_v34 = vpop.f32.mrb[117].mxu0  ;;  %v2304_v36 = vmax.f32 %v2240_v30, 0.0  ;;  %v1960_v37 = vadd.f32 %v1959_v33, %v1670_v31  ;;  %v1961_v38 = vpop.f32.mrb[117].mxu1 }
 0x251   : > { %v3036_v35 = vpack.c.bf16 %v2303_v29, %v2303_v29  ;;  %v1673_v39 = vpop.f32.mrb[118].mxu0  ;;  %v1962_v42 = vpop.f32.mrb[118].mxu1 }
 0x252   : > { %v1675_v43 = vpop.f32.mrb[119].mxu0  ;;  %v3037_v44 = vpack.c.bf16 %v2304_v36, %v2304_v36  ;;  %v2040_v45 = vadd.f32 %v1960_v37, %v374_v32  ;;  %v1963_v46 = vadd.f32 %v1962_v42, %v1673_v39  ;;  %v1964_v47 = vpop.f32.mrb[119].mxu1 }
 0x253   : > { %2624 = vst.msk [vmem:[%s4031_s25 + $0xd8] sm:$0xf] %vm2569_vm1, %v3036_v35 }
 0x254   : > { %v2170_v48 = vld [vmem:[#allocation2 + $0x1c0] sm:$0xff]  ;;  %2625 = vst.msk [vmem:[%s4031_s25 + $0xdc] sm:$0xf] %vm2569_vm1, %v3037_v44  ;;  %v2041_v50 = vadd.f32 %v1963_v46, %v375_v41 }
 0x255   : > { %v2241_v49 = vadd.f32 %v4185_v21, %v2170_v48  ;;  %2105 = vst.msk [vmem:[#allocation2 + $0x1d0] sm:$0xff] %vm251_vm0, %v2040_v45  ;;  %v2171_v51 = vld [vmem:[#allocation2 + $0x1c8] sm:$0xff] }
 0x256   : > { %v2242_v53 = vadd.f32 %v4185_v21, %v2171_v51  ;;  %2106 = vst.msk [vmem:[#allocation2 + $0x1d8] sm:$0xff] %vm251_vm0, %v2041_v50 }
 0x257   : > { %v2305_v52 = vmax.f32 %v2241_v49, 0.0  ;;  %v1678_v54 = vpop.f32.mrb[120].mxu0  ;;  %v1967_v56 = vpop.f32.mrb[120].mxu1 }
 0x258   : > { %v1680_v57 = vpop.f32.mrb[121].mxu0  ;;  %v2306_v59 = vmax.f32 %v2242_v53, 0.0  ;;  %v1968_v60 = vadd.f32 %v1967_v56, %v1678_v54  ;;  %v1969_v61 = vpop.f32.mrb[121].mxu1 }
 0x259   : > { %v3038_v58 = vpack.c.bf16 %v2305_v52, %v2305_v52  ;;  %v1681_v62 = vpop.f32.mrb[122].mxu0  ;;  %v1970_v0 = vpop.f32.mrb[122].mxu1 }
 0x25a   : > { %v1683_v1 = vpop.f32.mrb[123].mxu0  ;;  %v3039_v2 = vpack.c.bf16 %v2306_v59, %v2306_v59  ;;  %v2042_v3 = vadd.f32 %v1968_v60, %v376_v55  ;;  %v1971_v4 = vadd.f32 %v1970_v0, %v1681_v62  ;;  %v1972_v5 = vpop.f32.mrb[123].mxu1 }
 0x25b   : > { %2626 = vst.msk [vmem:[%s4031_s25 + $0xe0] sm:$0xf] %vm2569_vm1, %v3038_v58 }
 0x25c   : > { %v2172_v6 = vld [vmem:[#allocation2 + $0x1d0] sm:$0xff]  ;;  %2627 = vst.msk [vmem:[%s4031_s25 + $0xe4] sm:$0xf] %vm2569_vm1, %v3039_v2  ;;  %v2043_v8 = vadd.f32 %v1971_v4, %v377_v63 }
 0x25d   : > { %v2243_v7 = vadd.f32 %v4185_v21, %v2172_v6  ;;  %2107 = vst.msk [vmem:[#allocation2 + $0x1e0] sm:$0xff] %vm251_vm0, %v2042_v3  ;;  %v2173_v9 = vld [vmem:[#allocation2 + $0x1d8] sm:$0xff] }
 0x25e   : > { %v2244_v11 = vadd.f32 %v4185_v21, %v2173_v9  ;;  %2108 = vst.msk [vmem:[#allocation2 + $0x1e8] sm:$0xff] %vm251_vm0, %v2043_v8 }
 0x25f   : > { %v2307_v10 = vmax.f32 %v2243_v7, 0.0  ;;  %v1686_v12 = vpop.f32.mrb[124].mxu0  ;;  %v1975_v14 = vpop.f32.mrb[124].mxu1 }
 0x260   : > { %v1688_v15 = vpop.f32.mrb[125].mxu0  ;;  %v2308_v17 = vmax.f32 %v2244_v11, 0.0  ;;  %v1976_v18 = vadd.f32 %v1975_v14, %v1686_v12  ;;  %v1977_v19 = vpop.f32.mrb[125].mxu1 }
 0x261   : > { %v3040_v16 = vpack.c.bf16 %v2307_v10, %v2307_v10  ;;  %v1689_v20 = vpop.f32.mrb[126].mxu0  ;;  %v1978_v23 = vpop.f32.mrb[126].mxu1 }
 0x262   : > { %v1691_v24 = vpop.f32.mrb[127].mxu0  ;;  %v3041_v25 = vpack.c.bf16 %v2308_v17, %v2308_v17  ;;  %v2044_v26 = vadd.f32 %v1976_v18, %v378_v13  ;;  %v1979_v27 = vadd.f32 %v1978_v23, %v1689_v20  ;;  %v1980_v28 = vpop.f32.mrb[127].mxu1 }
 0x263   : > { %2628 = vst.msk [vmem:[%s4031_s25 + $0xe8] sm:$0xf] %vm2569_vm1, %v3040_v16 }
 0x264   : > { %v2174_v40 = vld [vmem:[#allocation2 + $0x1e0] sm:$0xff]  ;;  %2629 = vst.msk [vmem:[%s4031_s25 + $0xec] sm:$0xf] %vm2569_vm1, %v3041_v25  ;;  %v2045_v30 = vadd.f32 %v1979_v27, %v379_v22 }
 0x265   : > { %v2245_v29 = vadd.f32 %v4185_v21, %v2174_v40  ;;  %2109 = vst.msk [vmem:[#allocation2 + $0x1f0] sm:$0xff] %vm251_vm0, %v2044_v26  ;;  %v2175_v31 = vld [vmem:[#allocation2 + $0x1e8] sm:$0xff] }
 0x266   : > { %v2246_v33 = vadd.f32 %v4185_v21, %v2175_v31  ;;  %2110 = vst.msk [vmem:[#allocation2 + $0x1f8] sm:$0xff] %vm251_vm0, %v2045_v30 }
 0x267   : > { %v2309_v32 = vmax.f32 %v2245_v29, 0.0 }
 0x268   : > { %v2310_v35 = vmax.f32 %v2246_v33, 0.0 }
 0x269   : > { %v3042_v34 = vpack.c.bf16 %v2309_v32, %v2309_v32 }
 0x26a   : > { %v3043_v36 = vpack.c.bf16 %v2310_v35, %v2310_v35 }
 0x26b   : > { %2630 = vst.msk [vmem:[%s4031_s25 + $0xf0] sm:$0xf] %vm2569_vm1, %v3042_v34 }
 0x26c   : > { %v2176_v37 = vld [vmem:[#allocation2 + $0x1f0] sm:$0xff]  ;;  %2631 = vst.msk [vmem:[%s4031_s25 + $0xf4] sm:$0xf] %vm2569_vm1, %v3043_v36 }
 0x26d   : > { %v2247_v38 = vadd.f32 %v4185_v21, %v2176_v37  ;;  %v2177_v39 = vld [vmem:[#allocation2 + $0x1f8] sm:$0xff] }
 0x26e   : > { %v2248_v42 = vadd.f32 %v4185_v21, %v2177_v39 }
 0x26f   : > { %v2311_v41 = vmax.f32 %v2247_v38, 0.0 }
 0x270   : > { %v2312_v44 = vmax.f32 %v2248_v42, 0.0 }
 0x271   : > { %v3044_v43 = vpack.c.bf16 %v2311_v41, %v2311_v41 }
 0x272   : > { %v3045_v45 = vpack.c.bf16 %v2312_v44, %v2312_v44 }
 0x273   : > { %2632 = vst.msk [vmem:[%s4031_s25 + $0xf8] sm:$0xf] %vm2569_vm1, %v3044_v43 }
 0x274   : > { %2633 = vst.msk [vmem:[%s4031_s25 + $0xfc] sm:$0xf] %vm2569_vm1, %v3045_v45 }
 0x275 PF: > { %s17_s17 = sadd.s32 1, %s3453_s17   ;;  %s4332_s11 = smov %s4339_s12 }
 0x276   : > { %p14_p4 = scmp.ge.s32.totalorder %s17_s17, 6   ;;  %s4333_s12 = smov %s3437_s13 }
 0x277   : > { %s4334_s13 = smov %s3441_s14  ;;  %s4335_s14 = smov %s3615_s7 }
 0x278   : > { %s4336_s15 = smov %s3449_s16  ;;  %s4337_s16 = smov %s4332_s11 }
 0x279   :  { %16 = sbr.rel (!%p14_p4) target bundleno = 5 (0x5), region = 87 }
 0x280   :  { %2656 = vsyncpa [#allocation4], 1 }
 0x281   :  { %2658 = vsyncpa [#allocation4 + $0x1], 1 }
 0x282   :  { %2659 = vsyncpa [#allocation6], 1 }

</bundles_post_ra>
